<compile_context>
chip_gen: v5e
topology: v5e:2x2
jax: 0.10.0
libtpu: 0.0.40
codegen_flags: <defaults>
</compile_context>

<pallas_src>
import functools

import numpy as np
import jax
import jax.numpy as jnp
from jax import lax
from jax.experimental import pallas as pl
from jax.experimental.pallas import tpu as pltpu

NUM_ITERS = 6
NUM_LAYERS = 3

# Data budget used to size the batch tile; stays inside the 48 MiB scoped VMEM
# we request (safe on v7x's 64 MiB physical VMEM, trivially on v5e/v6e).
_VMEM_DATA_BUDGET = 40 * 1024 * 1024
_VMEM_LIMIT_BYTES = 48 * 1024 * 1024


def _round_up(x, m):
    return ((x + m - 1) // m) * m


def set2set_kernel(feats_ref, w0_ref, wr_ref, bias_ref, out_ref, *,
                   compute_dtype, mxu_attention):
    cd = compute_dtype
    Bt, N, D = feats_ref.shape
    L = NUM_LAYERS

    # Hoist the (small) weight loads; bias stays (1, 4D) -> free sublane
    # broadcast inside the gate add.
    w0 = w0_ref[...].astype(cd)                               # (3D, 4D) = [Wq; Wr; Whh0]^T
    wr = [wr_ref[l].astype(cd) for l in range(L - 1)]         # (2D, 4D) = [Wih; Whh]^T
    bias = [bias_ref[l] for l in range(L)]                    # (1, 4D), f32

    def lstm_cell(gates, c_prev):
        # gate lane layout is [i | f | o | g]: one sigmoid pass, one tanh pass.
        sig = jax.nn.sigmoid(gates[:, :3 * D])
        g = jnp.tanh(gates[:, 3 * D:])
        i = sig[:, :D]
        f = sig[:, D:2 * D]
        o = sig[:, 2 * D:3 * D]
        c_new = f * c_prev + i * g
        return o * jnp.tanh(c_new), c_new

    def attention(q):
        # q: (Bt, D).  feats is re-read from the ref at each use so no
        # (Bt, N, D) value stays live across iterations.
        if mxu_attention:
            feats = feats_ref[...].astype(cd)
            e = lax.dot_general(feats, q.astype(cd),
                                (((2,), (1,)), ((0,), (0,))),
                                preferred_element_type=jnp.float32)         # (Bt, N)
        else:
            feats = feats_ref[...].astype(jnp.float32)
            e = jnp.sum(feats * q[:, None, :].astype(jnp.float32), axis=-1)  # (Bt, N)
        e = e - jnp.max(e, axis=-1, keepdims=True)
        p = jnp.exp(e)
        alpha = p * pl.reciprocal(jnp.sum(p, axis=-1, keepdims=True), approx=True)
        if mxu_attention:
            feats = feats_ref[...].astype(cd)
            r = lax.dot_general(alpha.astype(cd), feats,
                                (((1,), (1,)), ((0,), (0,))),
                                preferred_element_type=jnp.float32)         # (Bt, D)
        else:
            feats = feats_ref[...].astype(jnp.float32)
            r = jnp.sum(alpha[:, :, None] * feats, axis=1)                   # (Bt, D)
        return r

    # ---- iteration 0 (peeled): q_star = 0, h = c = 0, so the LSTM step is the
    # same for every graph -> compute once at row-dim 1 and broadcast. ----
    zero1 = jnp.zeros((1, D), jnp.float32)
    h1 = [None] * L
    c1 = [None] * L
    h1[0], c1[0] = lstm_cell(bias[0], zero1)          # layer-0 gates are just the bias
    for l in range(1, L):
        x = jnp.concatenate([h1[l - 1], zero1], axis=-1).astype(cd)          # (1, 2D)
        gates = jnp.dot(x, wr[l - 1], preferred_element_type=jnp.float32) + bias[l]
        h1[l], c1[l] = lstm_cell(gates, zero1)

    q0 = jnp.broadcast_to(h1[L - 1], (Bt, D))
    r0 = attention(q0)                                # (Bt, D) — feats differ per graph
    carry0 = (tuple(jnp.broadcast_to(h1[l], (Bt, D)) for l in range(L)),
              tuple(jnp.broadcast_to(c1[l], (Bt, D)) for l in range(L)),
              q0, r0)

    # ---- iterations 1 .. NUM_ITERS-1: fori_loop bounds the live ranges of the
    # eight (Bt, D) state tensors (a static unroll keeps them all live). ----
    def step(_, carry):
        h, c, q, r = carry
        # layer 0: fused input+recurrent matmul, LHS = [q | r | h0], K = 3D
        x0 = jnp.concatenate([q, r, h[0]], axis=-1).astype(cd)               # (Bt, 3D)
        gates = jnp.dot(x0, w0, preferred_element_type=jnp.float32) + bias[0]
        h_new = [None] * L
        c_new = [None] * L
        h_new[0], c_new[0] = lstm_cell(gates, c[0])
        for l in range(1, L):
            xl = jnp.concatenate([h_new[l - 1], h[l]], axis=-1).astype(cd)   # (Bt, 2D)
            gates = jnp.dot(xl, wr[l - 1],
                            preferred_element_type=jnp.float32) + bias[l]
            h_new[l], c_new[l] = lstm_cell(gates, c[l])
        q_new = h_new[L - 1]
        r_new = attention(q_new)
        return (tuple(h_new), tuple(c_new), q_new, r_new)

    _, _, q, r = lax.fori_loop(1, NUM_ITERS, step, carry0)

    # Single concatenation at the final write; lane-padded so the store is
    # unmasked (wrapper pads the output's last dim to a multiple of 128).
    out = jnp.concatenate([q, r], axis=-1)
    lane_pad = out_ref.shape[-1] - 2 * D
    if lane_pad:
        out = jnp.concatenate([out, jnp.zeros((Bt, lane_pad), out.dtype)], axis=-1)
    out_ref[...] = out.astype(out_ref.dtype)


def set2set(feats, params, *, batch_tile=None, use_bf16=False, mxu_attention=None):
    """Run the Set2Set forward pass.  feats: (B, N, D) f32 -> (B, 2D) f32.

    use_bf16=True feeds bf16 operands to the MXU (f32 accumulation) and halves
    the feats footprint; recommended on v6e/v7x, benchmark before enabling on
    v5e (no bf16 VPU/EUP there).  mxu_attention=None auto-selects the VPU
    mul+reduce attention path unless N and D are large.
    """
    B, N, D = feats.shape
    L = NUM_LAYERS
    compute_dtype = jnp.bfloat16 if use_bf16 else jnp.float32
    if mxu_attention is None:
        mxu_attention = (D >= 256 and N >= 128)

    out_lanes = _round_up(2 * D, 128)          # lane-dense final store

    w0 = params["w0"]
    wr = params["wr"]
    bias = params["bias"]                      # stays f32
    if use_bf16:
        feats = feats.astype(jnp.bfloat16)
        w0 = w0.astype(jnp.bfloat16)
        wr = wr.astype(jnp.bfloat16)

    feats_isz = feats.dtype.itemsize
    w_isz = w0.dtype.itemsize
    weight_bytes = (3 * D * 4 * D + (L - 1) * 2 * D * 4 * D) * w_isz + L * 4 * D * 4

    # ---- batch tile from a VMEM budget instead of a fixed cap. ----
    if batch_tile is None:
        b8 = _round_up(max(B, 1), 8)
        cap = min(256, b8)
        # v7x has 2 TensorCores: keep >= 2 grid steps whenever the batch allows
        # it so dimension_semantics=("parallel",) can split graphs across cores.
        if b8 >= 16:
            cap = min(cap, _round_up(b8 // 2, 8))
        bt = max(8, (cap // 8) * 8)

        def _fits(t):
            need = (2 * t * N * D * feats_isz      # feats tile, double-buffered
                    + 2 * t * out_lanes * 4        # out tile, double-buffered
                    + 2 * weight_bytes)            # weights/bias (dbl-buffered blocks)
            return need <= _VMEM_DATA_BUDGET

        while bt > 8 and not _fits(bt):
            bt -= 8
        batch_tile = bt
    Bt = _round_up(max(batch_tile, 8), 8)

    B_pad = _round_up(max(B, 1), Bt)
    if B_pad != B:
        feats = jnp.pad(feats, ((0, B_pad - B), (0, 0), (0, 0)))

    def _full_spec(arr):
        nd = arr.ndim
        return pl.BlockSpec(arr.shape, lambda b, nd=nd: (0,) * nd)

    kernel = functools.partial(set2set_kernel, compute_dtype=compute_dtype,
                               mxu_attention=mxu_attention)

    flops = NUM_ITERS * B_pad * (2 * (3 * D + 2 * 2 * D) * 4 * D + 4 * N * D)
    transcendentals = NUM_ITERS * B_pad * (L * 5 * D + N)
    bytes_accessed = (B_pad * N * D * feats_isz + weight_bytes
                      + B_pad * out_lanes * 4)

    out = pl.pallas_call(
        kernel,
        out_shape=jax.ShapeDtypeStruct((B_pad, out_lanes), jnp.float32),
        grid=(B_pad // Bt,),
        in_specs=[
            pl.BlockSpec((Bt, N, D), lambda b: (b, 0, 0)),   # feats: tiled over batch
            _full_spec(w0),
            _full_spec(wr),
            _full_spec(bias),
        ],
        out_specs=pl.BlockSpec((Bt, out_lanes), lambda b: (b, 0)),
        compiler_params=pltpu.CompilerParams(
            dimension_semantics=("parallel",),               # batch-parallel across TCs
            vmem_limit_bytes=_VMEM_LIMIT_BYTES),
        cost_estimate=pl.CostEstimate(
            flops=int(flops),
            transcendentals=int(transcendentals),
            bytes_accessed=int(bytes_accessed)),
    )(feats, w0, wr, bias)

    return out[:B, :2 * D]


def _reorder_gates(w, D):
    """PyTorch LSTM gate blocks [i, f, g, o] -> kernel layout [i, f, o, g]."""
    return jnp.concatenate([w[:D], w[D:2 * D], w[3 * D:], w[2 * D:3 * D]], axis=0)


def init_params(key, in_dim, num_layers=NUM_LAYERS):
    """Deterministic init matching nn.LSTM.reset_parameters: U(-k, k), k=1/sqrt(H).

    Returns kernel-layout params (gate order [i,f,o,g], fused/transposed
    [W_ih; W_hh] stacks) plus the raw PyTorch-layout tensors for the reference.
    """
    D = in_dim
    k = 1.0 / np.sqrt(D)
    keys = jax.random.split(key, 4 * num_layers)
    wih, whh, bih, bhh = [], [], [], []
    for l in range(num_layers):
        in_sz = 2 * D if l == 0 else D
        wih.append(jax.random.uniform(keys[4 * l + 0], (4 * D, in_sz),
                                      jnp.float32, -k, k))
        whh.append(jax.random.uniform(keys[4 * l + 1], (4 * D, D),
                                      jnp.float32, -k, k))
        bih.append(jax.random.uniform(keys[4 * l + 2], (4 * D,), jnp.float32, -k, k))
        bhh.append(jax.random.uniform(keys[4 * l + 3], (4 * D,), jnp.float32, -k, k))

    wih_r = [_reorder_gates(w, D) for w in wih]
    whh_r = [_reorder_gates(w, D) for w in whh]
    b_r = [_reorder_gates(bih[l] + bhh[l], D) for l in range(num_layers)]

    # Layer 0: LHS = [q | r | h0]  ->  W0 = [Wih0^T (2D rows); Whh0^T (D rows)] : (3D, 4D)
    w0 = jnp.concatenate([wih_r[0].T, whh_r[0].T], axis=0)
    # Layers 1..L-1: LHS = [h_{l-1} | h_l]  ->  [Wih^T; Whh^T] : (2D, 4D)
    wr = jnp.stack([jnp.concatenate([wih_r[l].T, whh_r[l].T], axis=0)
                    for l in range(1, num_layers)], axis=0)
    bias = jnp.stack([b[None, :] for b in b_r], axis=0)          # (L, 1, 4D)

    return {
        "w0": w0, "wr": wr, "bias": bias,
        "raw": {"wih": wih, "whh": whh, "bih": bih, "bhh": bhh},
    }


def set2set_reference(feats, params):
    """Pure-JAX reference mirroring the PyTorch forward (dense, equal-sized graphs),
    using the raw PyTorch-layout LSTM weights (gate order [i, f, g, o])."""
    B, N, D = feats.shape
    raw = params["raw"]
    h = [jnp.zeros((B, D), jnp.float32) for _ in range(NUM_LAYERS)]
    c = [jnp.zeros((B, D), jnp.float32) for _ in range(NUM_LAYERS)]
    q_star = jnp.zeros((B, 2 * D), jnp.float32)
    for _ in range(NUM_ITERS):
        x = q_star
        for l in range(NUM_LAYERS):
            gates = (x @ raw["wih"][l].T + h[l] @ raw["whh"][l].T
                     + raw["bih"][l] + raw["bhh"][l])
            i = jax.nn.sigmoid(gates[:, 0 * D:1 * D])
            f = jax.nn.sigmoid(gates[:, 1 * D:2 * D])
            g = jnp.tanh(gates[:, 2 * D:3 * D])
            o = jax.nn.sigmoid(gates[:, 3 * D:4 * D])
            c[l] = f * c[l] + i * g
            h[l] = o * jnp.tanh(c[l])
            x = h[l]
        q = h[-1]
        e = jnp.sum(feats * q[:, None, :], axis=-1)
        alpha = jax.nn.softmax(e, axis=-1)
        r = jnp.sum(alpha[:, :, None] * feats, axis=1)
        q_star = jnp.concatenate([q, r], axis=-1)
    return q_star


if __name__ == "__main__":
    # TODO(synk): ragged DGL batched graphs (variable nodes/graph) would need a
    # node-validity mask in the softmax/readout; this kernel assumes dense
    # equal-sized graphs.
    B, N, D = 2, 8, 32          # batch of 2 graphs, 8 nodes each, in_dim=32
    key = jax.random.PRNGKey(0)
    k_feats, k_params = jax.random.split(key)

    feats = jax.random.normal(k_feats, (B, N, D), jnp.float32)
    params = init_params(k_params, D)

    out = set2set(feats, params)        # f32 path; use_bf16=True for v6e/v7x throughput
    out = jax.block_until_ready(out)

    ref = set2set_reference(feats, params)
    np.testing.assert_allclose(np.asarray(out), np.asarray(ref),
                               rtol=1e-2, atol=1e-2)
    assert out.shape == (B, 2 * D)
    print("KERNEL_OK")
</pallas_src>

<mosaic_0001>
module attributes {stable_mosaic.version = 11 : i64} {
  func.func @set2set_kernel(%arg0: i32, %arg1: memref<8x8x32xf32, #tpu.memory_space<vmem>>, %arg2: memref<96x128xf32, #tpu.memory_space<vmem>>, %arg3: memref<2x64x128xf32, #tpu.memory_space<vmem>>, %arg4: memref<3x1x128xf32, #tpu.memory_space<vmem>>, %arg5: memref<8x128xf32, #tpu.memory_space<vmem>>) attributes {dimension_semantics = [#tpu.dimension_semantics<parallel>], iteration_bounds = array<i64: 1>, scalar_prefetch = 0 : i64, scratch_operands = 0 : i64, tpu.core_type = #tpu.core_type<tc>, window_params = [{transform_indices = @transform_0, window_bounds = array<i64: 8, 8, 32>}, {pipeline_mode = #tpu.pipeline_mode<synchronous>, transform_indices = @transform_1, window_bounds = array<i64: 96, 128>}, {pipeline_mode = #tpu.pipeline_mode<synchronous>, transform_indices = @transform_2, window_bounds = array<i64: 2, 64, 128>}, {pipeline_mode = #tpu.pipeline_mode<synchronous>, transform_indices = @transform_3, window_bounds = array<i64: 3, 1, 128>}, {transform_indices = @transform_4, window_bounds = array<i64: 8, 128>}]} {
    %c0 = arith.constant 0 : index
    %c0_0 = arith.constant 0 : index
    %0 = vector.load %arg2[%c0, %c0_0] : memref<96x128xf32, #tpu.memory_space<vmem>>, vector<96x128xf32>
    %c0_1 = arith.constant 0 : index
    %c0_2 = arith.constant 0 : index
    %c0_3 = arith.constant 0 : index
    %1 = vector.load %arg3[%c0_1, %c0_2, %c0_3] : memref<2x64x128xf32, #tpu.memory_space<vmem>>, vector<1x64x128xf32>
    %2 = vector.shape_cast %1 : vector<1x64x128xf32> to vector<64x128xf32>
    %c1 = arith.constant 1 : index
    %c0_4 = arith.constant 0 : index
    %c0_5 = arith.constant 0 : index
    %3 = vector.load %arg3[%c1, %c0_4, %c0_5] : memref<2x64x128xf32, #tpu.memory_space<vmem>>, vector<1x64x128xf32>
    %4 = vector.shape_cast %3 : vector<1x64x128xf32> to vector<64x128xf32>
    %c0_6 = arith.constant 0 : index
    %c0_7 = arith.constant 0 : index
    %c0_8 = arith.constant 0 : index
    %5 = vector.load %arg4[%c0_6, %c0_7, %c0_8] : memref<3x1x128xf32, #tpu.memory_space<vmem>>, vector<1x1x128xf32>
    %6 = vector.shape_cast %5 : vector<1x1x128xf32> to vector<1x128xf32>
    %c1_9 = arith.constant 1 : index
    %c0_10 = arith.constant 0 : index
    %c0_11 = arith.constant 0 : index
    %7 = vector.load %arg4[%c1_9, %c0_10, %c0_11] : memref<3x1x128xf32, #tpu.memory_space<vmem>>, vector<1x1x128xf32>
    %8 = vector.shape_cast %7 : vector<1x1x128xf32> to vector<1x128xf32>
    %c2 = arith.constant 2 : index
    %c0_12 = arith.constant 0 : index
    %c0_13 = arith.constant 0 : index
    %9 = vector.load %arg4[%c2, %c0_12, %c0_13] : memref<3x1x128xf32, #tpu.memory_space<vmem>>, vector<1x1x128xf32>
    %10 = vector.shape_cast %9 : vector<1x1x128xf32> to vector<1x128xf32>
    %cst = arith.constant 0.000000e+00 : f32
    %11 = vector.broadcast %cst : f32 to vector<1x32xf32>
    %12 = vector.extract_strided_slice %6 {offsets = [0, 0], sizes = [1, 96], strides = [1, 1]} : vector<1x128xf32> to vector<1x96xf32>
    %13 = arith.negf %12 : vector<1x96xf32>
    %14 = math.exp %13 : vector<1x96xf32>
    %cst_14 = arith.constant 1.000000e+00 : f32
    %15 = vector.broadcast %cst_14 : f32 to vector<1x96xf32>
    %16 = arith.addf %15, %14 : vector<1x96xf32>
    %17 = arith.divf %15, %16 : vector<1x96xf32>
    %18 = vector.extract_strided_slice %6 {offsets = [0, 96], sizes = [1, 32], strides = [1, 1]} : vector<1x128xf32> to vector<1x32xf32>
    %19 = math.tanh %18 : vector<1x32xf32>
    %20 = vector.extract_strided_slice %17 {offsets = [0, 0], sizes = [1, 32], strides = [1, 1]} : vector<1x96xf32> to vector<1x32xf32>
    %21 = vector.extract_strided_slice %17 {offsets = [0, 32], sizes = [1, 32], strides = [1, 1]} : vector<1x96xf32> to vector<1x32xf32>
    %22 = vector.extract_strided_slice %17 {offsets = [0, 64], sizes = [1, 32], strides = [1, 1]} : vector<1x96xf32> to vector<1x32xf32>
    %23 = arith.mulf %21, %11 : vector<1x32xf32>
    %24 = arith.mulf %20, %19 : vector<1x32xf32>
    %25 = arith.addf %23, %24 : vector<1x32xf32>
    %26 = math.tanh %25 : vector<1x32xf32>
    %27 = arith.mulf %22, %26 : vector<1x32xf32>
    %28 = tpu.concatenate %27, %11 in 1 : vector<1x32xf32>, vector<1x32xf32> -> vector<1x64xf32>
    %cst_15 = arith.constant dense<0.000000e+00> : vector<1x128xf32>
    %29 = tpu.matmul %28, %2, %cst_15 {dimension_numbers = #tpu.dot_dimension_numbers<[1], [0], [0], [1], [0, 0, 1, 1], [], []>} : vector<1x64xf32>, vector<64x128xf32>, vector<1x128xf32> -> vector<1x128xf32>
    %30 = arith.addf %29, %8 : vector<1x128xf32>
    %31 = vector.extract_strided_slice %30 {offsets = [0, 0], sizes = [1, 96], strides = [1, 1]} : vector<1x128xf32> to vector<1x96xf32>
    %32 = arith.negf %31 : vector<1x96xf32>
    %33 = math.exp %32 : vector<1x96xf32>
    %cst_16 = arith.constant 1.000000e+00 : f32
    %34 = vector.broadcast %cst_16 : f32 to vector<1x96xf32>
    %35 = arith.addf %34, %33 : vector<1x96xf32>
    %36 = arith.divf %34, %35 : vector<1x96xf32>
    %37 = vector.extract_strided_slice %30 {offsets = [0, 96], sizes = [1, 32], strides = [1, 1]} : vector<1x128xf32> to vector<1x32xf32>
    %38 = math.tanh %37 : vector<1x32xf32>
    %39 = vector.extract_strided_slice %36 {offsets = [0, 0], sizes = [1, 32], strides = [1, 1]} : vector<1x96xf32> to vector<1x32xf32>
    %40 = vector.extract_strided_slice %36 {offsets = [0, 32], sizes = [1, 32], strides = [1, 1]} : vector<1x96xf32> to vector<1x32xf32>
    %41 = vector.extract_strided_slice %36 {offsets = [0, 64], sizes = [1, 32], strides = [1, 1]} : vector<1x96xf32> to vector<1x32xf32>
    %42 = arith.mulf %40, %11 : vector<1x32xf32>
    %43 = arith.mulf %39, %38 : vector<1x32xf32>
    %44 = arith.addf %42, %43 : vector<1x32xf32>
    %45 = math.tanh %44 : vector<1x32xf32>
    %46 = arith.mulf %41, %45 : vector<1x32xf32>
    %47 = tpu.concatenate %46, %11 in 1 : vector<1x32xf32>, vector<1x32xf32> -> vector<1x64xf32>
    %cst_17 = arith.constant dense<0.000000e+00> : vector<1x128xf32>
    %48 = tpu.matmul %47, %4, %cst_17 {dimension_numbers = #tpu.dot_dimension_numbers<[1], [0], [0], [1], [0, 0, 1, 1], [], []>} : vector<1x64xf32>, vector<64x128xf32>, vector<1x128xf32> -> vector<1x128xf32>
    %49 = arith.addf %48, %10 : vector<1x128xf32>
    %50 = vector.extract_strided_slice %49 {offsets = [0, 0], sizes = [1, 96], strides = [1, 1]} : vector<1x128xf32> to vector<1x96xf32>
    %51 = arith.negf %50 : vector<1x96xf32>
    %52 = math.exp %51 : vector<1x96xf32>
    %cst_18 = arith.constant 1.000000e+00 : f32
    %53 = vector.broadcast %cst_18 : f32 to vector<1x96xf32>
    %54 = arith.addf %53, %52 : vector<1x96xf32>
    %55 = arith.divf %53, %54 : vector<1x96xf32>
    %56 = vector.extract_strided_slice %49 {offsets = [0, 96], sizes = [1, 32], strides = [1, 1]} : vector<1x128xf32> to vector<1x32xf32>
    %57 = math.tanh %56 : vector<1x32xf32>
    %58 = vector.extract_strided_slice %55 {offsets = [0, 0], sizes = [1, 32], strides = [1, 1]} : vector<1x96xf32> to vector<1x32xf32>
    %59 = vector.extract_strided_slice %55 {offsets = [0, 32], sizes = [1, 32], strides = [1, 1]} : vector<1x96xf32> to vector<1x32xf32>
    %60 = vector.extract_strided_slice %55 {offsets = [0, 64], sizes = [1, 32], strides = [1, 1]} : vector<1x96xf32> to vector<1x32xf32>
    %61 = arith.mulf %59, %11 : vector<1x32xf32>
    %62 = arith.mulf %58, %57 : vector<1x32xf32>
    %63 = arith.addf %61, %62 : vector<1x32xf32>
    %64 = math.tanh %63 : vector<1x32xf32>
    %65 = arith.mulf %60, %64 : vector<1x32xf32>
    %66 = vector.shape_cast %65 : vector<1x32xf32> to vector<1x32xf32>
    %67 = vector.broadcast %66 : vector<1x32xf32> to vector<8x32xf32>
    %c0_19 = arith.constant 0 : index
    %c0_20 = arith.constant 0 : index
    %c0_21 = arith.constant 0 : index
    %68 = vector.load %arg1[%c0_19, %c0_20, %c0_21] : memref<8x8x32xf32, #tpu.memory_space<vmem>>, vector<8x8x32xf32>
    %69 = vector.shape_cast %67 : vector<8x32xf32> to vector<8x1x32xf32>
    %70 = vector.broadcast %69 : vector<8x1x32xf32> to vector<8x8x32xf32>
    %71 = arith.mulf %68, %70 : vector<8x8x32xf32>
    %cst_22 = arith.constant dense<0.000000e+00> : vector<8x8xf32>
    %72 = vector.multi_reduction <add>, %71, %cst_22 [2] : vector<8x8x32xf32> to vector<8x8xf32>
    %cst_23 = arith.constant dense<0xFF800000> : vector<8xf32>
    %73 = vector.multi_reduction <maximumf>, %72, %cst_23 [1] : vector<8x8xf32> to vector<8xf32>
    %74 = vector.shape_cast %73 : vector<8xf32> to vector<8x1xf32>
    %75 = vector.broadcast %74 : vector<8x1xf32> to vector<8x8xf32>
    %76 = arith.subf %72, %75 : vector<8x8xf32>
    %77 = math.exp %76 : vector<8x8xf32>
    %cst_24 = arith.constant dense<0.000000e+00> : vector<8xf32>
    %78 = vector.multi_reduction <add>, %77, %cst_24 [1] : vector<8x8xf32> to vector<8xf32>
    %79 = vector.shape_cast %78 : vector<8xf32> to vector<8x1xf32>
    %80 = tpu.reciprocal %79 {approx = true} : vector<8x1xf32> -> vector<8x1xf32>
    %81 = vector.broadcast %80 : vector<8x1xf32> to vector<8x8xf32>
    %82 = arith.mulf %77, %81 : vector<8x8xf32>
    %c0_25 = arith.constant 0 : index
    %c0_26 = arith.constant 0 : index
    %c0_27 = arith.constant 0 : index
    %83 = vector.load %arg1[%c0_25, %c0_26, %c0_27] : memref<8x8x32xf32, #tpu.memory_space<vmem>>, vector<8x8x32xf32>
    %84 = vector.shape_cast %82 : vector<8x8xf32> to vector<8x8x1xf32>
    %85 = vector.broadcast %84 : vector<8x8x1xf32> to vector<8x8x32xf32>
    %86 = arith.mulf %85, %83 : vector<8x8x32xf32>
    %cst_28 = arith.constant dense<0.000000e+00> : vector<8x32xf32>
    %87 = vector.multi_reduction <add>, %86, %cst_28 [1] : vector<8x8x32xf32> to vector<8x32xf32>
    %88 = vector.shape_cast %27 : vector<1x32xf32> to vector<1x32xf32>
    %89 = vector.broadcast %88 : vector<1x32xf32> to vector<8x32xf32>
    %90 = vector.shape_cast %46 : vector<1x32xf32> to vector<1x32xf32>
    %91 = vector.broadcast %90 : vector<1x32xf32> to vector<8x32xf32>
    %92 = vector.shape_cast %65 : vector<1x32xf32> to vector<1x32xf32>
    %93 = vector.broadcast %92 : vector<1x32xf32> to vector<8x32xf32>
    %94 = vector.shape_cast %25 : vector<1x32xf32> to vector<1x32xf32>
    %95 = vector.broadcast %94 : vector<1x32xf32> to vector<8x32xf32>
    %96 = vector.shape_cast %44 : vector<1x32xf32> to vector<1x32xf32>
    %97 = vector.broadcast %96 : vector<1x32xf32> to vector<8x32xf32>
    %98 = vector.shape_cast %63 : vector<1x32xf32> to vector<1x32xf32>
    %99 = vector.broadcast %98 : vector<1x32xf32> to vector<8x32xf32>
    %c0_i32 = arith.constant 0 : i32
    %c5_i32 = arith.constant 5 : i32
    %100 = arith.addi %c0_i32, %c5_i32 : i32
    %c1_i32 = arith.constant 1 : i32
    %101:8 = scf.for %arg6 = %c0_i32 to %100 step %c1_i32 iter_args(%arg7 = %89, %arg8 = %91, %arg9 = %93, %arg10 = %95, %arg11 = %97, %arg12 = %99, %arg13 = %67, %arg14 = %87) -> (vector<8x32xf32>, vector<8x32xf32>, vector<8x32xf32>, vector<8x32xf32>, vector<8x32xf32>, vector<8x32xf32>, vector<8x32xf32>, vector<8x32xf32>)  : i32 {
      %106 = tpu.concatenate %arg13, %arg14, %arg7 in 1 : vector<8x32xf32>, vector<8x32xf32>, vector<8x32xf32> -> vector<8x96xf32>
      %cst_32 = arith.constant dense<0.000000e+00> : vector<8x128xf32>
      %107 = tpu.matmul %106, %0, %cst_32 {dimension_numbers = #tpu.dot_dimension_numbers<[1], [0], [0], [1], [0, 0, 1, 1], [], []>} : vector<8x96xf32>, vector<96x128xf32>, vector<8x128xf32> -> vector<8x128xf32>
      %108 = vector.broadcast %6 : vector<1x128xf32> to vector<8x128xf32>
      %109 = arith.addf %107, %108 : vector<8x128xf32>
      %110 = vector.extract_strided_slice %109 {offsets = [0, 0], sizes = [8, 96], strides = [1, 1]} : vector<8x128xf32> to vector<8x96xf32>
      %111 = arith.negf %110 : vector<8x96xf32>
      %112 = math.exp %111 : vector<8x96xf32>
      %cst_33 = arith.constant 1.000000e+00 : f32
      %113 = vector.broadcast %cst_33 : f32 to vector<8x96xf32>
      %114 = arith.addf %113, %112 : vector<8x96xf32>
      %115 = arith.divf %113, %114 : vector<8x96xf32>
      %116 = vector.extract_strided_slice %109 {offsets = [0, 96], sizes = [8, 32], strides = [1, 1]} : vector<8x128xf32> to vector<8x32xf32>
      %117 = math.tanh %116 : vector<8x32xf32>
      %118 = vector.extract_strided_slice %115 {offsets = [0, 0], sizes = [8, 32], strides = [1, 1]} : vector<8x96xf32> to vector<8x32xf32>
      %119 = vector.extract_strided_slice %115 {offsets = [0, 32], sizes = [8, 32], strides = [1, 1]} : vector<8x96xf32> to vector<8x32xf32>
      %120 = vector.extract_strided_slice %115 {offsets = [0, 64], sizes = [8, 32], strides = [1, 1]} : vector<8x96xf32> to vector<8x32xf32>
      %121 = arith.mulf %119, %arg10 : vector<8x32xf32>
      %122 = arith.mulf %118, %117 : vector<8x32xf32>
      %123 = arith.addf %121, %122 : vector<8x32xf32>
      %124 = math.tanh %123 : vector<8x32xf32>
      %125 = arith.mulf %120, %124 : vector<8x32xf32>
      %126 = tpu.concatenate %125, %arg8 in 1 : vector<8x32xf32>, vector<8x32xf32> -> vector<8x64xf32>
      %cst_34 = arith.constant dense<0.000000e+00> : vector<8x128xf32>
      %127 = tpu.matmul %126, %2, %cst_34 {dimension_numbers = #tpu.dot_dimension_numbers<[1], [0], [0], [1], [0, 0, 1, 1], [], []>} : vector<8x64xf32>, vector<64x128xf32>, vector<8x128xf32> -> vector<8x128xf32>
      %128 = vector.broadcast %8 : vector<1x128xf32> to vector<8x128xf32>
      %129 = arith.addf %127, %128 : vector<8x128xf32>
      %130 = vector.extract_strided_slice %129 {offsets = [0, 0], sizes = [8, 96], strides = [1, 1]} : vector<8x128xf32> to vector<8x96xf32>
      %131 = arith.negf %130 : vector<8x96xf32>
      %132 = math.exp %131 : vector<8x96xf32>
      %cst_35 = arith.constant 1.000000e+00 : f32
      %133 = vector.broadcast %cst_35 : f32 to vector<8x96xf32>
      %134 = arith.addf %133, %132 : vector<8x96xf32>
      %135 = arith.divf %133, %134 : vector<8x96xf32>
      %136 = vector.extract_strided_slice %129 {offsets = [0, 96], sizes = [8, 32], strides = [1, 1]} : vector<8x128xf32> to vector<8x32xf32>
      %137 = math.tanh %136 : vector<8x32xf32>
      %138 = vector.extract_strided_slice %135 {offsets = [0, 0], sizes = [8, 32], strides = [1, 1]} : vector<8x96xf32> to vector<8x32xf32>
      %139 = vector.extract_strided_slice %135 {offsets = [0, 32], sizes = [8, 32], strides = [1, 1]} : vector<8x96xf32> to vector<8x32xf32>
      %140 = vector.extract_strided_slice %135 {offsets = [0, 64], sizes = [8, 32], strides = [1, 1]} : vector<8x96xf32> to vector<8x32xf32>
      %141 = arith.mulf %139, %arg11 : vector<8x32xf32>
      %142 = arith.mulf %138, %137 : vector<8x32xf32>
      %143 = arith.addf %141, %142 : vector<8x32xf32>
      %144 = math.tanh %143 : vector<8x32xf32>
      %145 = arith.mulf %140, %144 : vector<8x32xf32>
      %146 = tpu.concatenate %145, %arg9 in 1 : vector<8x32xf32>, vector<8x32xf32> -> vector<8x64xf32>
      %cst_36 = arith.constant dense<0.000000e+00> : vector<8x128xf32>
      %147 = tpu.matmul %146, %4, %cst_36 {dimension_numbers = #tpu.dot_dimension_numbers<[1], [0], [0], [1], [0, 0, 1, 1], [], []>} : vector<8x64xf32>, vector<64x128xf32>, vector<8x128xf32> -> vector<8x128xf32>
      %148 = vector.broadcast %10 : vector<1x128xf32> to vector<8x128xf32>
      %149 = arith.addf %147, %148 : vector<8x128xf32>
      %150 = vector.extract_strided_slice %149 {offsets = [0, 0], sizes = [8, 96], strides = [1, 1]} : vector<8x128xf32> to vector<8x96xf32>
      %151 = arith.negf %150 : vector<8x96xf32>
      %152 = math.exp %151 : vector<8x96xf32>
      %cst_37 = arith.constant 1.000000e+00 : f32
      %153 = vector.broadcast %cst_37 : f32 to vector<8x96xf32>
      %154 = arith.addf %153, %152 : vector<8x96xf32>
      %155 = arith.divf %153, %154 : vector<8x96xf32>
      %156 = vector.extract_strided_slice %149 {offsets = [0, 96], sizes = [8, 32], strides = [1, 1]} : vector<8x128xf32> to vector<8x32xf32>
      %157 = math.tanh %156 : vector<8x32xf32>
      %158 = vector.extract_strided_slice %155 {offsets = [0, 0], sizes = [8, 32], strides = [1, 1]} : vector<8x96xf32> to vector<8x32xf32>
      %159 = vector.extract_strided_slice %155 {offsets = [0, 32], sizes = [8, 32], strides = [1, 1]} : vector<8x96xf32> to vector<8x32xf32>
      %160 = vector.extract_strided_slice %155 {offsets = [0, 64], sizes = [8, 32], strides = [1, 1]} : vector<8x96xf32> to vector<8x32xf32>
      %161 = arith.mulf %159, %arg12 : vector<8x32xf32>
      %162 = arith.mulf %158, %157 : vector<8x32xf32>
      %163 = arith.addf %161, %162 : vector<8x32xf32>
      %164 = math.tanh %163 : vector<8x32xf32>
      %165 = arith.mulf %160, %164 : vector<8x32xf32>
      %c0_38 = arith.constant 0 : index
      %c0_39 = arith.constant 0 : index
      %c0_40 = arith.constant 0 : index
      %166 = vector.load %arg1[%c0_38, %c0_39, %c0_40] : memref<8x8x32xf32, #tpu.memory_space<vmem>>, vector<8x8x32xf32>
      %167 = vector.shape_cast %165 : vector<8x32xf32> to vector<8x1x32xf32>
      %168 = vector.broadcast %167 : vector<8x1x32xf32> to vector<8x8x32xf32>
      %169 = arith.mulf %166, %168 : vector<8x8x32xf32>
      %cst_41 = arith.constant dense<0.000000e+00> : vector<8x8xf32>
      %170 = vector.multi_reduction <add>, %169, %cst_41 [2] : vector<8x8x32xf32> to vector<8x8xf32>
      %cst_42 = arith.constant dense<0xFF800000> : vector<8xf32>
      %171 = vector.multi_reduction <maximumf>, %170, %cst_42 [1] : vector<8x8xf32> to vector<8xf32>
      %172 = vector.shape_cast %171 : vector<8xf32> to vector<8x1xf32>
      %173 = vector.broadcast %172 : vector<8x1xf32> to vector<8x8xf32>
      %174 = arith.subf %170, %173 : vector<8x8xf32>
      %175 = math.exp %174 : vector<8x8xf32>
      %cst_43 = arith.constant dense<0.000000e+00> : vector<8xf32>
      %176 = vector.multi_reduction <add>, %175, %cst_43 [1] : vector<8x8xf32> to vector<8xf32>
      %177 = vector.shape_cast %176 : vector<8xf32> to vector<8x1xf32>
      %178 = tpu.reciprocal %177 {approx = true} : vector<8x1xf32> -> vector<8x1xf32>
      %179 = vector.broadcast %178 : vector<8x1xf32> to vector<8x8xf32>
      %180 = arith.mulf %175, %179 : vector<8x8xf32>
      %c0_44 = arith.constant 0 : index
      %c0_45 = arith.constant 0 : index
      %c0_46 = arith.constant 0 : index
      %181 = vector.load %arg1[%c0_44, %c0_45, %c0_46] : memref<8x8x32xf32, #tpu.memory_space<vmem>>, vector<8x8x32xf32>
      %182 = vector.shape_cast %180 : vector<8x8xf32> to vector<8x8x1xf32>
      %183 = vector.broadcast %182 : vector<8x8x1xf32> to vector<8x8x32xf32>
      %184 = arith.mulf %183, %181 : vector<8x8x32xf32>
      %cst_47 = arith.constant dense<0.000000e+00> : vector<8x32xf32>
      %185 = vector.multi_reduction <add>, %184, %cst_47 [1] : vector<8x8x32xf32> to vector<8x32xf32>
      scf.yield %125, %145, %165, %123, %143, %163, %165, %185 : vector<8x32xf32>, vector<8x32xf32>, vector<8x32xf32>, vector<8x32xf32>, vector<8x32xf32>, vector<8x32xf32>, vector<8x32xf32>, vector<8x32xf32>
    }
    %102 = tpu.concatenate %101#6, %101#7 in 1 : vector<8x32xf32>, vector<8x32xf32> -> vector<8x64xf32>
    %cst_29 = arith.constant 0.000000e+00 : f32
    %103 = vector.broadcast %cst_29 : f32 to vector<8x64xf32>
    %104 = tpu.concatenate %102, %103 in 1 : vector<8x64xf32>, vector<8x64xf32> -> vector<8x128xf32>
    %c0_30 = arith.constant 0 : index
    %c0_31 = arith.constant 0 : index
    %105 = vector.load %arg5[%c0_30, %c0_31] : memref<8x128xf32, #tpu.memory_space<vmem>>, vector<8x128xf32>
    tpu.vector_store %arg5[%c0_30, %c0_31], %104 {strides = array<i32>} : memref<8x128xf32, #tpu.memory_space<vmem>>, vector<8x128xf32>,
    return
  }
  func.func @transform_0(%arg0: i32) -> (i32, i32, i32) {
    %c0_i32 = arith.constant 0 : i32
    %c0_i32_0 = arith.constant 0 : i32
    %c0_i32_1 = arith.constant 0 : i32
    return %arg0, %c0_i32, %c0_i32_0 : i32, i32, i32
  }
  func.func @transform_1(%arg0: i32) -> (i32, i32) {
    %c0_i32 = arith.constant 0 : i32
    %c0_i32_0 = arith.constant 0 : i32
    %c0_i32_1 = arith.constant 0 : i32
    return %c0_i32, %c0_i32_0 : i32, i32
  }
  func.func @transform_2(%arg0: i32) -> (i32, i32, i32) {
    %c0_i32 = arith.constant 0 : i32
    %c0_i32_0 = arith.constant 0 : i32
    %c0_i32_1 = arith.constant 0 : i32
    %c0_i32_2 = arith.constant 0 : i32
    return %c0_i32, %c0_i32_0, %c0_i32_1 : i32, i32, i32
  }
  func.func @transform_3(%arg0: i32) -> (i32, i32, i32) {
    %c0_i32 = arith.constant 0 : i32
    %c0_i32_0 = arith.constant 0 : i32
    %c0_i32_1 = arith.constant 0 : i32
    %c0_i32_2 = arith.constant 0 : i32
    return %c0_i32, %c0_i32_0, %c0_i32_1 : i32, i32, i32
  }
  func.func @transform_4(%arg0: i32) -> (i32, i32) {
    %c0_i32 = arith.constant 0 : i32
    %c0_i32_0 = arith.constant 0 : i32
    return %arg0, %c0_i32 : i32, i32
  }
}

</mosaic_0001>

<bundles_post_ra>
// kernel: tpu_custom_call.1
= control target key start
LH: loop header
LB: loop body
LE: loop exit
PB: predicated region body
PF: predicated region fallthrough
CT: control target
= control target key end

     0   :  { %9 = vsyncpa [#allocation3], 0  ;;  %s2382_s0 = inlined_call_operand.hbm [shape: f32[8,8,32], index: 0, kind: input, shape index: {}]   ;;  %s2383_s1 = inlined_call_operand.hbm [shape: f32[96,128], index: 1, kind: input, shape index: {}]   ;;  %s2384_s2 = inlined_call_operand.hbm [shape: f32[2,64,128], index: 2, kind: input, shape index: {}]   ;;  %s2385_s3 = inlined_call_operand.hbm [shape: f32[3,1,128], index: 3, kind: input, shape index: {}]   ;;  %s2386_s4 = inlined_call_operand.hbm [shape: f32[8,128], index: 4, kind: output, shape index: {}]  }
   0x1   :  { %10 = vsyncpa [#allocation6], 0 }
   0x2   :  { %11 = vsyncpa [#allocation9], 0 }
   0x3   :  { %12 = vsyncpa [#allocation4], 0  ;;  %s30_s17 = sshll.u32 %s2383_s1, 4  ;;  %s1788_s18 = smov [#allocation5]   ;;  %s31_s17 = int_to_ptr.hbm [resolvable:$true] %s30_s17 }
   0x4   :  { %s32_s19 = sshll.u32 %s1788_s18, 4  ;;  %s17_s22 = sshll.u32 %s2382_s0, 4  ;;  %s33_s19 = int_to_ptr.vmem [resolvable:$true] %s32_s19  ;;  %s18_s22 = int_to_ptr.hbm [resolvable:$true] %s17_s22 }
   0x5   :  { %s1789_s23 = smov 128   ;;  %s1790_s24 = smov 8  }
   0x6   :  { %38 = dma.hbm_to_vmem [thread:$0]  %s31_s17, 1536, %s33_s19, [#allocation6], %s1789_s23, %s1789_s23, %s1790_s24  }
   0x7   :  { %s1791_s25 = smov [#allocation2]   ;;  %s43_s29 = sshll.u32 %s2384_s2, 4  ;;  %s44_s29 = int_to_ptr.hbm [resolvable:$true] %s43_s29 }
   0x8   :  { %s19_s26 = sshll.u32 %s1791_s25, 4  ;;  %s56_s5 = sshll.u32 %s2385_s3, 4  ;;  %s20_s26 = int_to_ptr.vmem [resolvable:$true] %s19_s26  ;;  %s57_s5 = int_to_ptr.hbm [resolvable:$true] %s56_s5 }
   0x9   :  { %25 = dma.hbm_to_vmem [thread:$0]  %s18_s22, 1024, %s20_s26, [#allocation3], %s1789_s23, %s1789_s23, %s1790_s24  }
   0xa   :  { %s1792_s6 = smov [#allocation7]   ;;  %s1793_s0 = smov [#allocation8]  }
   0xb   :  { %s45_s7 = sshll.u32 %s1792_s6, 4  ;;  %s58_s8 = sshll.u32 %s1793_s0, 4  ;;  %s46_s7 = int_to_ptr.vmem [resolvable:$true] %s45_s7  ;;  %s59_s8 = int_to_ptr.vmem [resolvable:$true] %s58_s8 }
   0xc   :  { %51 = dma.hbm_to_vmem [thread:$0]  %s44_s29, 2048, %s46_s7, [#allocation6], %s1789_s23, %s1789_s23, %s1790_s24  }
   0xd   :  { %s1794_s9 = smov 16   ;;  %s1795_s10 = smov 1  }
   0xe   :  { %64 = dma.hbm_to_vmem [thread:$0]  %s57_s5, 48, %s59_s8, [#allocation9], %s1794_s9, %s1794_s9, %s1795_s10  }
   0xf   :  { %1720 = dma.done.wait [#allocation3], 1024  }
  0x10   :  { %1721 = vsyncadd [#allocation3], 4294966272 }
  0x11   :  { %1722 = dma.done.wait [#allocation6], 3584  }
  0x12   :  { %1723 = vsyncadd [#allocation6], 4294963712 }
  0x13   :  { %1724 = dma.done.wait [#allocation9], 48  }
  0x14   :  { %1725 = vsyncadd [#allocation9], 4294967248  ;;  %v1841_v0 = vld [vmem:[#allocation5] sm:$0xff]  ;;  %v1843_v1 = vld [vmem:[#allocation5 + $0x8] sm:$0xff]  ;;  %s1796_s2 = smov 32   ;;  %s1797_s3 = smov 64  }
  0x15   :  { %2394 = vst [vmem:[#allocation15_spill] sm:$0xff] %v1841_v0  ;;  %v1845_v2 = vld [vmem:[#allocation5 + $0x10] sm:$0xff]  ;;  %v1847_v3 = vld [vmem:[#allocation5 + $0x18] sm:$0xff]  ;;  %v1849_v4 = vld [vmem:[#allocation5 + $0x20] sm:$0xff]  ;;  %vm157_vm4 = vcmask 261120   ;;  %vm159_vm5 = vcmask 523264  }
  0x16   :  { %2395 = vst [vmem:[#allocation16_spill] sm:$0xff] %v1843_v1  ;;  %v1851_v5 = vld [vmem:[#allocation5 + $0x28] sm:$0xff]  ;;  %v1853_v6 = vld [vmem:[#allocation5 + $0x30] sm:$0xff]  ;;  %v1855_v7 = vld [vmem:[#allocation5 + $0x38] sm:$0xff]  ;;  %vm384_vm14 = vcmask 1041409   ;;  %vm386_vm15 = vcmask 1042434  }
  0x17   :  { %2396 = vst [vmem:[#allocation17_spill] sm:$0xff] %v1845_v2  ;;  %v1857_v8 = vld [vmem:[#allocation5 + $0x40] sm:$0xff]  ;;  %v1859_v9 = vld [vmem:[#allocation5 + $0x48] sm:$0xff]  ;;  %v1861_v10 = vld [vmem:[#allocation5 + $0x50] sm:$0xff]  ;;  %s2105_s11 = smov 0  }
  0x18   :  { %2397 = vst [vmem:[#allocation18_spill] sm:$0xff] %v1847_v3  ;;  %v1863_v11 = vld [vmem:[#allocation5 + $0x58] sm:$0xff]  ;;  %v1865_v12 = vld [vmem:[#allocation8] sm:$0x1]  ;;  %v1878_v35 = vld [vmem:[#allocation7 + $0x30] sm:$0xff] }
  0x19   :  { %2398 = vst [vmem:[#allocation19_spill] sm:$0xff] %v1849_v4  ;;  %1453 = vtanh.f32 %v1865_v12  ;;  %v1303_v14 = vmul.f32 -1.442695, %v1865_v12  ;;  %v1876_v34 = vld [vmem:[#allocation7 + $0x38] sm:$0xff]  ;;  %v1881_v36 = vld [vmem:[#allocation7 + $0x28] sm:$0xff]  ;;  %v1884_v37 = vld [vmem:[#allocation7 + $0x20] sm:$0xff] }
  0x1a   :  { %2399 = vst [vmem:[#allocation20_spill] sm:$0xff] %v1865_v12  ;;  %171 = vmatpush.msra.mxu0 %v1876_v34  ;;  %v1887_v38 = vld [vmem:[#allocation7 + $0x18] sm:$0xff]  ;;  %v1890_v39 = vld [vmem:[#allocation7 + $0x10] sm:$0xff]  ;;  %v1893_v40 = vld [vmem:[#allocation7 + $0x8] sm:$0xff] }
  0x1b   :  { %1455 = vpow2.f32 %v1303_v14  ;;  %v1903_v44 = vld [vmem:[#allocation7] sm:$0xff] }
  0x1c   :  { %172 = vmatpush.msra.mxu0 %v1878_v35  ;;  %2400 = vst [vmem:[#allocation21_spill] sm:$0xff] %v1903_v44  ;;  %v1908_v47 = vld [vmem:[#allocation8 + $0x1] sm:$0x1] }
  0x1d   :  { %2401 = vst [vmem:[#allocation22_spill] sm:$0xff] %v1908_v47 }
  0x1e   :  { %173 = vmatpush.msra.mxu0 %v1881_v36 }
  0x1f   :  { %v1454_v13 = vpop.eup %1453 }
  0x20   :  { %137 = vrot.lane.b32.xlu0 %v1454_v13, %s1796_s2  ;;  %174 = vmatpush.msra.mxu0 %v1884_v37 }
  0x21   :  { %v1456_v15 = vpop.eup %1455 }
  0x22   :  { %v118_v16 = vadd.f32 1.0, %v1456_v15  ;;  %175 = vmatpush.msra.mxu0 %v1887_v38 }
  0x24   :  { %1457 = vrcp.f32 %v118_v16  ;;  %vm124_vm0 = vweird.f32 %v118_v16  ;;  %v130_v21 = vand.u32 2147483648, %v118_v16  ;;  %v128_v23 = vand.u32 2147483647, %v118_v16  ;;  %176 = vmatpush.msra.mxu0 %v1890_v39 }
  0x26   :  { %v131_v24 = vor.u32 1.1754944e-38, %v130_v21  ;;  %vm129_vm3 = vcmp.eq.f32.partialorder %v128_v23, 8.507059e+37  ;;  %177 = vmatpush.msra.mxu0 %v1893_v40  ;;  %v1920_v21 = vld [vmem:[#allocation7 + $0x70] sm:$0xff]  ;;  %v1926_v23 = vld [vmem:[#allocation7 + $0x60] sm:$0xff] }
  0x28   :  { %178 = vmatpush.msra.mxu0 %v1903_v44 }
  0x2a   :  { %v1458_v17 = vpop.eup %1457 }
  0x2b   :  { %v120_v18 = vmul.f32 %v1458_v17, %v118_v16  ;;  %vm125_vm1 = vweird.f32 %v1458_v17 }
  0x2c   :  { %vm126_vm2 = vmor %vm124_vm0, %vm125_vm1  ;;  %vm388_vm0 = vcmask 1043459   ;;  %vm390_vm1 = vcmask 1044484  }
  0x2d   :  { %v121_v19 = vsub.f32 1.0, %v120_v18 }
  0x2f   :  { %v122_v20 = vmul.f32 %v1458_v17, %v121_v19 }
  0x31   :  { %v123_v22 = vadd.f32 %v1458_v17, %v122_v20  ;;  %v1918_v20 = vld [vmem:[#allocation7 + $0x78] sm:$0xff] }
  0x32   :  { %236 = vmatpush.msra.mxu1 %v1918_v20 }
  0x33   :  { %v127_v25 = vsel %vm126_vm2, %v1458_v17, %v123_v22  ;;  %v1923_v22 = vld [vmem:[#allocation7 + $0x68] sm:$0xff]  ;;  %vm392_vm2 = vcmask 1045509  }
  0x34   :  { %v132_v26 = vsel %vm129_vm3, %v131_v24, %v127_v25  ;;  %237 = vmatpush.msra.mxu1 %v1920_v21  ;;  %v1929_v24 = vld [vmem:[#allocation7 + $0x58] sm:$0xff]  ;;  %v1932_v25 = vld [vmem:[#allocation7 + $0x50] sm:$0xff]  ;;  %vm394_vm3 = vcmask 1046534  }
  0x35   :  { %v135_v29 = vmul.f32 0.0, %v132_v26 }
  0x36   :  { %238 = vmatpush.msra.mxu1 %v1923_v22 }
  0x38   :  { %239 = vmatpush.msra.mxu1 %v1926_v23 }
  0x3a   :  { %240 = vmatpush.msra.mxu1 %v1929_v24 }
  0x3c   :  { %241 = vmatpush.msra.mxu1 %v1932_v25 }
  0x92   :  { %v138_v27 = vpop.permute.xlu0 %137 }
  0x93   :  { %v140_v28 = vmul.f32 %v138_v27, %v132_v26 }
  0x95   :  { %142 = vrot.lane.b32.xlu0 %v140_v28, %s1796_s2 }
 0x107   :  { %v143_v30 = vpop.permute.xlu0 %142 }
 0x108   :  { %v1871_v31 = vadd.f32 %v143_v30, %v135_v29  ;;  %v1944_v30 = vld [vmem:[#allocation7 + $0x40] sm:$0xff] }
 0x109   :  { %2403 = vst [vmem:[#allocation24_spill] sm:$0xff] %v1944_v30 }
 0x10a   :  { %1459 = vtanh.f32 %v1871_v31 }
 0x110   :  { %v1460_v33 = vpop.eup %1459 }
 0x111   :  { %148 = vrot.lane.b32.xlu1 %v1460_v33, %s1796_s2 }
 0x183   :  { %v149_v41 = vpop.permute.xlu1 %148 }
 0x184   :  { %v1897_v42 = vmul.f32 %v149_v41, %v132_v26  ;;  %v1935_v26 = vld [vmem:[#allocation7 + $0x48] sm:$0xff] }
 0x185   :  { %2402 = vst [vmem:[#allocation23_spill] sm:$0xff] %v1935_v26  ;;  %242 = vmatpush.msra.mxu1 %v1935_v26 }
 0x186   :  { %v2387_v43 = vperm.slane %v1897_v42, 0  }
 0x187   :  { %243 = vmatpush.msra.mxu1 %v1944_v30 }
 0x188   :  { %154 = vrot.lane.b32.xlu1 %v2387_v43, %s1797_s3 }
 0x1fa   :  { %v155_v45 = vpop.permute.xlu1 %154 }
 0x1fb   :  { %v158_v46 = vsel %vm157_vm4, %v155_v45, 0.0  ;;  %v1949_v45 = vld [vmem:[#allocation8 + $0x2] sm:$0x1] }
 0x1fc   :  { %1304 = vmatmul.msk.f32.vlgmr.msra.gmra.mxu0 %vm159_vm5, %v158_v46  ;;  %2404 = vst [vmem:[#allocation25_spill] sm:$0xff] %v1949_v45 }
 0x279   :  { %v180_v48 = vpop.f32.mrf.mxu0 }
 0x27a   :  { %v181_v49 = vadd.f32 %v180_v48, %v1908_v47 }
 0x27c   :  { %1461 = vtanh.f32 %v181_v49  ;;  %v1305_v51 = vmul.f32 -1.442695, %v181_v49 }
 0x27e   :  { %1463 = vpow2.f32 %v1305_v51 }
 0x282   :  { %v1462_v50 = vpop.eup %1461 }
 0x283   :  { %205 = vrot.lane.b32.xlu2 %v1462_v50, %s1796_s2 }
 0x284   :  { %v1464_v52 = vpop.eup %1463 }
 0x285   :  { %v186_v53 = vadd.f32 1.0, %v1464_v52 }
 0x287   :  { %1465 = vrcp.f32 %v186_v53  ;;  %v198_v59 = vand.u32 2147483648, %v186_v53  ;;  %vm192_vm7 = vweird.f32 %v186_v53  ;;  %v196_v60 = vand.u32 2147483647, %v186_v53 }
 0x289   :  { %v199_v62 = vor.u32 1.1754944e-38, %v198_v59  ;;  %vm197_vm9 = vcmp.eq.f32.partialorder %v196_v60, 8.507059e+37 }
 0x28d   :  { %v1466_v54 = vpop.eup %1465 }
 0x28e   :  { %v188_v55 = vmul.f32 %v1466_v54, %v186_v53  ;;  %vm193_vm6 = vweird.f32 %v1466_v54 }
 0x28f   :  { %vm194_vm8 = vmor %vm192_vm7, %vm193_vm6  ;;  %vm396_vm6 = vcmask 1047559   ;;  %vm399_vm7 = vcmask 64512  }
 0x290   :  { %v189_v56 = vsub.f32 1.0, %v188_v55 }
 0x292   :  { %v190_v57 = vmul.f32 %v1466_v54, %v189_v56 }
 0x294   :  { %v191_v58 = vadd.f32 %v1466_v54, %v190_v57 }
 0x296   :  { %v195_v61 = vsel %vm194_vm8, %v1466_v54, %v191_v58 }
 0x297   :  { %v200_v13 = vsel %vm197_vm9, %v199_v62, %v195_v61 }
 0x298   :  { %v203_v15 = vmul.f32 0.0, %v200_v13 }
 0x2dd   :  { %v206_v63 = vpop.permute.xlu2 %205 }
 0x2de   :  { %v208_v14 = vmul.f32 %v206_v63, %v200_v13 }
 0x2e0   :  { %210 = vrot.lane.b32.xlu2 %v208_v14, %s1796_s2 }
 0x33a   :  { %v211_v16 = vpop.permute.xlu2 %210 }
 0x33b   :  { %v1913_v17 = vadd.f32 %v211_v16, %v203_v15 }
 0x33d   :  { %1467 = vtanh.f32 %v1913_v17 }
 0x343   :  { %v1468_v19 = vpop.eup %1467 }
 0x344   :  { %216 = vrot.lane.b32.xlu0 %v1468_v19, %s1796_s2 }
 0x3b6   :  { %v217_v27 = vpop.permute.xlu0 %216 }
 0x3b7   :  { %v1939_v28 = vmul.f32 %v217_v27, %v200_v13 }
 0x3b9   :  { %221 = vrot.lane.b32.xlu1 %v1939_v28, %s1797_s3 }
 0x42b   :  { %v222_v33 = vpop.permute.xlu1 %221 }
 0x42c   :  { %v224_v41 = vsel %vm157_vm4, %v222_v33, 0.0 }
 0x42d   :  { %1306 = vmatmul.msk.f32.vlgmr.msra.gmra.mxu1 %vm159_vm5, %v224_v41 }
 0x4aa   :  { %v245_v46 = vpop.f32.mrf.mxu1 }
 0x4ab   :  { %v246_v48 = vadd.f32 %v245_v46, %v1949_v45  ;;  %v1798_v45 = vmov 0  }
 0x4ac   :  { %1452 = vset.pattern.permute.xlu2 %v1798_v45  ;;  %1451 = vset.pattern.permute.xlu1 %v1798_v45 }
 0x4ad   :  { %1469 = vtanh.f32 %v246_v48  ;;  %v1307_v50 = vmul.f32 -1.442695, %v246_v48  ;;  %1450 = vset.pattern.permute.xlu0 %v1798_v45 }
 0x4af   :  { %1471 = vpow2.f32 %v1307_v50 }
 0x4b3   :  { %v1470_v49 = vpop.eup %1469 }
 0x4b4   :  { %270 = vrot.lane.b32.xlu2 %v1470_v49, %s1796_s2 }
 0x4b5   :  { %v1472_v51 = vpop.eup %1471 }
 0x4b6   :  { %v251_v52 = vadd.f32 1.0, %v1472_v51 }
 0x4b8   :  { %1473 = vrcp.f32 %v251_v52  ;;  %v263_v58 = vand.u32 2147483648, %v251_v52  ;;  %vm257_vm11 = vweird.f32 %v251_v52  ;;  %v261_v59 = vand.u32 2147483647, %v251_v52 }
 0x4ba   :  { %v264_v61 = vor.u32 1.1754944e-38, %v263_v58  ;;  %vm262_vm13 = vcmp.eq.f32.partialorder %v261_v59, 8.507059e+37 }
 0x4be   :  { %v1474_v53 = vpop.eup %1473 }
 0x4bf   :  { %v253_v54 = vmul.f32 %v1474_v53, %v251_v52  ;;  %vm258_vm10 = vweird.f32 %v1474_v53 }
 0x4c0   :  { %vm259_vm12 = vmor %vm257_vm11, %vm258_vm10 }
 0x4c1   :  { %v254_v55 = vsub.f32 1.0, %v253_v54 }
 0x4c3   :  { %v255_v56 = vmul.f32 %v1474_v53, %v254_v55 }
 0x4c5   :  { %v256_v57 = vadd.f32 %v1474_v53, %v255_v56 }
 0x4c7   :  { %v260_v60 = vsel %vm259_vm12, %v1474_v53, %v256_v57 }
 0x4c8   :  { %v265_v63 = vsel %vm262_vm13, %v264_v61, %v260_v60 }
 0x4c9   :  { %v268_v14 = vmul.f32 0.0, %v265_v63 }
 0x50e   :  { %v271_v62 = vpop.permute.xlu2 %270 }
 0x50f   :  { %v273_v13 = vmul.f32 %v271_v62, %v265_v63 }
 0x511   :  { %275 = vrot.lane.b32.xlu0 %v273_v13, %s1796_s2 }
 0x583   :  { %v276_v15 = vpop.permute.xlu0 %275 }
 0x584   :  { %v1954_v16 = vadd.f32 %v276_v15, %v268_v14 }
 0x586   :  { %1475 = vtanh.f32 %v1954_v16 }
 0x58c   :  { %v1476_v27 = vpop.eup %1475 }
 0x58d   :  { %281 = vrot.lane.b32.xlu1 %v1476_v27, %s1796_s2 }
 0x5ff   :  { %v282_v33 = vpop.permute.xlu1 %281 }
 0x600   :  { %v284_v41 = vmul.f32 %v282_v33, %v265_v63  ;;  %v1977_v63 = vld [vmem:[#allocation2] sm:$0xff]  ;;  %v1981_v33 = vld [vmem:[#allocation2 + $0x10] sm:$0xff] }
 0x602   :  { %v1959_v46 = vperm.slane %v284_v41, 0   ;;  %v1983_v41 = vld [vmem:[#allocation2 + $0x8] sm:$0xff] }
 0x604   :  { %v302_v48 = vperm.slane %v1959_v46, 0  ;;  %v296_v49 = vrot.slane %v1959_v46, 2  ;;  %v295_v50 = vrot.slane %v1959_v46, 1  ;;  %v297_v53 = vrot.slane %v1959_v46, 3 }
 0x605   :  { %v299_v54 = vrot.slane %v1959_v46, 5  ;;  %v298_v55 = vrot.slane %v1959_v46, 4  ;;  %v300_v59 = vrot.slane %v1959_v46, 6  ;;  %v301_v60 = vrot.slane %v1959_v46, 7 }
 0x606   :  { %310 = vrot.lane.b32.xlu2 %v302_v48, %s1797_s3  ;;  %v304_v51 = vperm.slane %v296_v49, 0  ;;  %v303_v52 = vperm.slane %v295_v50, 0  ;;  %v305_v56 = vperm.slane %v297_v53, 0 }
 0x607   :  { %v307_v57 = vperm.slane %v299_v54, 0  ;;  %v306_v58 = vperm.slane %v298_v55, 0  ;;  %v308_v61 = vperm.slane %v300_v59, 0  ;;  %v309_v62 = vperm.slane %v301_v60, 0  ;;  %v1989_v54 = vld [vmem:[#allocation2 + $0x18] sm:$0xff]  ;;  %v1991_v55 = vld [vmem:[#allocation2 + $0x30] sm:$0xff] }
 0x608   :  { %314 = vrot.lane.b32.xlu1 %v304_v51, %s1797_s3  ;;  %312 = vrot.lane.b32.xlu0 %v303_v52, %s1797_s3 }
 0x60e   :  { %316 = vrot.lane.b32.xlu2 %v305_v56, %s1797_s3 }
 0x610   :  { %320 = vrot.lane.b32.xlu1 %v307_v57, %s1797_s3  ;;  %318 = vrot.lane.b32.xlu0 %v306_v58, %s1797_s3  ;;  %v1993_v57 = vld [vmem:[#allocation2 + $0x20] sm:$0xff] }
 0x616   :  { %322 = vrot.lane.b32.xlu2 %v308_v61, %s1797_s3 }
 0x618   :  { %324 = vrot.lane.b32.xlu0 %v309_v62, %s1797_s3 }
 0x660   :  { %v311_v13 = vpop.permute.xlu2 %310 }
 0x661   :  { %v334_v14 = vmul.f32 %v311_v13, %v1977_v63 }
 0x663   :  { %v342_v15 = vsel %vm157_vm4, %v334_v14, 0.0 }
 0x664   :  { %343 = vadd.xlane.f32.xlu1 %v342_v15  ;;  %v2001_v15 = vld [vmem:[#allocation2 + $0x28] sm:$0xff] }
 0x668   :  { %v317_v27 = vpop.permute.xlu2 %316 }
 0x669   :  { %v337_v58 = vmul.f32 %v317_v27, %v1989_v54 }
 0x66b   :  { %v351_v13 = vsel %vm157_vm4, %v337_v58, 0.0  ;;  %v374_v58 = vlaneseq }
 0x670   :  { %v323_v56 = vpop.permute.xlu2 %322 }
 0x671   :  { %v340_v59 = vmul.f32 %v323_v56, %v1991_v55 }
 0x673   :  { %v360_v62 = vsel %vm157_vm4, %v340_v59, 0.0 }
 0x67a   :  { %v315_v48 = vpop.permute.xlu1 %314  ;;  %v313_v49 = vpop.permute.xlu0 %312 }
 0x67b   :  { %v336_v50 = vmul.f32 %v315_v48, %v1981_v33  ;;  %v335_v51 = vmul.f32 %v313_v49, %v1983_v41  ;;  %v2003_v49 = vld [vmem:[#allocation2 + $0x38] sm:$0xff] }
 0x67d   :  { %v348_v52 = vsel %vm157_vm4, %v336_v50, 0.0  ;;  %v345_v53 = vsel %vm157_vm4, %v335_v51, 0.0 }
 0x67e   :  { %349 = vadd.xlane.f32.xlu0 %v348_v52  ;;  %346 = vadd.xlane.f32.xlu2 %v345_v53 }
 0x682   :  { %v319_v60 = vpop.permute.xlu0 %318  ;;  %v321_v48 = vpop.permute.xlu1 %320 }
 0x683   :  { %v338_v61 = vmul.f32 %v319_v60, %v1993_v57  ;;  %v339_v27 = vmul.f32 %v321_v48, %v2001_v15  ;;  %v2009_v60 = vand.u32 127, %v374_v58 }
 0x685   :  { %v354_v14 = vsel %vm157_vm4, %v338_v61, 0.0  ;;  %v357_v52 = vsel %vm157_vm4, %v339_v27, 0.0 }
 0x686   :  { %361 = vadd.xlane.f32.xlu0 %v360_v62  ;;  %352 = vadd.xlane.f32.xlu2 %v351_v13 }
 0x687   :  { %355 = vadd.xlane.f32.xlu1 %v354_v14 }
 0x68a   :  { %v325_v50 = vpop.permute.xlu0 %324 }
 0x68b   :  { %v341_v51 = vmul.f32 %v325_v50, %v2003_v49 }
 0x68d   :  { %v363_v53 = vsel %vm157_vm4, %v341_v51, 0.0 }
 0x68e   :  { %358 = vadd.xlane.f32.xlu2 %v357_v52 }
 0x68f   :  { %364 = vadd.xlane.f32.xlu1 %v363_v53 }
 0x6d7   :  { %v344_v59 = vpop.xlane.xlu1 %343 }
 0x6d8   :  { %v376_v14 = vperm.slane %v344_v59, %v2009_v60 }
 0x6f1   :  { %v347_v56 = vpop.xlane.xlu2 %346  ;;  %v350_v61 = vpop.xlane.xlu0 %349 }
 0x6f2   :  { %v377_v62 = vperm.slane %v347_v56, %v2009_v60  ;;  %v378_v50 = vperm.slane %v350_v61, %v2009_v60 }
 0x6f4   :  { %v385_v27 = vsel %vm384_vm14, %v377_v62, %v376_v14 }
 0x6f5   :  { %v387_v52 = vsel %vm386_vm15, %v378_v50, %v385_v27 }
 0x6f9   :  { %v353_v13 = vpop.xlane.xlu2 %352  ;;  %v362_v43 = vpop.xlane.xlu0 %361 }
 0x6fa   :  { %v356_v48 = vpop.xlane.xlu1 %355  ;;  %v379_v51 = vperm.slane %v353_v13, %v2009_v60  ;;  %v382_v14 = vperm.slane %v362_v43, %v2009_v60 }
 0x6fb   :  { %v380_v53 = vperm.slane %v356_v48, %v2009_v60 }
 0x6fc   :  { %v389_v58 = vsel %vm388_vm0, %v379_v51, %v387_v52 }
 0x6fd   :  { %v391_v62 = vsel %vm390_vm1, %v380_v53, %v389_v58 }
 0x701   :  { %v359_v29 = vpop.xlane.xlu2 %358 }
 0x702   :  { %v381_v32 = vperm.slane %v359_v29, %v2009_v60  ;;  %v365_v18 = vpop.xlane.xlu1 %364 }
 0x703   :  { %v383_v19 = vperm.slane %v365_v18, %v2009_v60 }
 0x704   :  { %v393_v50 = vsel %vm392_vm2, %v381_v32, %v391_v62 }
 0x705   :  { %v395_v27 = vsel %vm394_vm3, %v382_v14, %v393_v50 }
 0x706   :  { %v397_v51 = vsel %vm396_vm6, %v383_v19, %v395_v27 }
 0x707   :  { %v400_v52 = vsel %vm399_vm7, %v397_v51, -inf }
 0x708   :  { %401 = vmax.xlane.f32.xlu2 %v400_v52 }
 0x77b   :  { %v402_v53 = vpop.xlane.xlu2 %401 }
 0x77c   :  { %v406_v58 = vperm.slane %v402_v53, 2  ;;  %v405_v47 = vperm.slane %v402_v53, 1  ;;  %v404_v12 = vperm.slane %v402_v53, 0  ;;  %v408_v32 = vperm.slane %v402_v53, 4 }
 0x77d   :  { %v407_v62 = vperm.slane %v402_v53, 3  ;;  %v411_v30 = vperm.slane %v402_v53, 7  ;;  %v410_v3 = vperm.slane %v402_v53, 6  ;;  %v409_v26 = vperm.slane %v402_v53, 5 }
 0x77e   :  { %v422_v0 = vsub.f32 %v350_v61, %v406_v58  ;;  %v421_v1 = vsub.f32 %v347_v56, %v405_v47  ;;  %v420_v2 = vsub.f32 %v344_v59, %v404_v12  ;;  %v424_v27 = vsub.f32 %v356_v48, %v408_v32 }
 0x77f   :  { %v423_v51 = vsub.f32 %v353_v13, %v407_v62  ;;  %v427_v52 = vsub.f32 %v365_v18, %v411_v30 }
 0x780   :  { %v432_v14 = vmul.f32 1.442695, %v422_v0  ;;  %v430_v50 = vmul.f32 1.442695, %v421_v1  ;;  %v428_v19 = vmul.f32 1.442695, %v420_v2  ;;  %v426_v0 = vsub.f32 %v362_v43, %v410_v3 }
 0x781   :  { %v436_v45 = vmul.f32 1.442695, %v424_v27  ;;  %v434_v44 = vmul.f32 1.442695, %v423_v51  ;;  %v442_v47 = vmul.f32 1.442695, %v427_v52  ;;  %v425_v1 = vsub.f32 %v359_v29, %v409_v26 }
 0x782   :  { %1477 = vpow2.f32 %v432_v14  ;;  %v440_v2 = vmul.f32 1.442695, %v426_v0 }
 0x783   :  { %1479 = vpow2.f32 %v430_v50  ;;  %v438_v18 = vmul.f32 1.442695, %v425_v1 }
 0x784   :  { %1481 = vpow2.f32 %v428_v19 }
 0x785   :  { %1483 = vpow2.f32 %v436_v45 }
 0x786   :  { %1485 = vpow2.f32 %v434_v44 }
 0x787   :  { %1487 = vpow2.f32 %v442_v47 }
 0x788   :  { %v2027_v4 = vpop.eup %1477  ;;  %1489 = vpow2.f32 %v440_v2 }
 0x789   :  { %v1480_v12 = vpop.eup %1479  ;;  %459 = vperm.xlu2 %1452, %v2027_v4   ;;  %1491 = vpow2.f32 %v438_v18 }
 0x78a   :  { %v1482_v56 = vpop.eup %1481  ;;  %456 = vperm.xlu1 %1451, %v1480_v12  }
 0x78b   :  { %453 = vperm.xlu0 %1450, %v1482_v56   ;;  %v1484_v30 = vpop.eup %1483 }
 0x78c   :  { %v1486_v59 = vpop.eup %1485 }
 0x78d   :  { %v1488_v61 = vpop.eup %1487 }
 0x78e   :  { %v1490_v13 = vpop.eup %1489 }
 0x78f   :  { %v1492_v48 = vpop.eup %1491 }
 0x791   :  { %465 = vperm.xlu2 %1452, %v1484_v30  }
 0x792   :  { %462 = vperm.xlu1 %1451, %v1486_v59  }
 0x793   :  { %474 = vperm.xlu0 %1450, %v1488_v61  }
 0x799   :  { %471 = vperm.xlu2 %1452, %v1490_v13  }
 0x79a   :  { %468 = vperm.xlu1 %1451, %v1492_v48  }
 0x7e3   :  { %v460_v53 = vpop.permute.xlu2 %459 }
 0x7e4   :  { %v478_v14 = vperm.slane %v460_v53, %v2009_v60 }
 0x7eb   :  { %v466_v44 = vpop.permute.xlu2 %465 }
 0x7ec   :  { %v480_v51 = vperm.slane %v466_v44, %v2009_v60 }
 0x7f3   :  { %v472_v19 = vpop.permute.xlu2 %471 }
 0x7f4   :  { %v482_v0 = vperm.slane %v472_v19, %v2009_v60 }
 0x7fc   :  { %v457_v3 = vpop.permute.xlu1 %456 }
 0x7fd   :  { %v454_v43 = vpop.permute.xlu0 %453  ;;  %v477_v26 = vperm.slane %v457_v3, %v2009_v60 }
 0x7fe   :  { %v476_v29 = vperm.slane %v454_v43, %v2009_v60 }
 0x800   :  { %v484_v32 = vsel %vm384_vm14, %v477_v26, %v476_v29 }
 0x801   :  { %v485_v50 = vsel %vm386_vm15, %v478_v14, %v484_v32 }
 0x804   :  { %v463_v58 = vpop.permute.xlu1 %462 }
 0x805   :  { %v479_v62 = vperm.slane %v463_v58, %v2009_v60  ;;  %v475_v52 = vpop.permute.xlu0 %474 }
 0x806   :  { %v483_v2 = vperm.slane %v475_v52, %v2009_v60 }
 0x807   :  { %v486_v27 = vsel %vm388_vm0, %v479_v62, %v485_v50 }
 0x808   :  { %v487_v1 = vsel %vm390_vm1, %v480_v51, %v486_v27 }
 0x80c   :  { %v469_v45 = vpop.permute.xlu1 %468 }
 0x80d   :  { %v481_v47 = vperm.slane %v469_v45, %v2009_v60 }
 0x80f   :  { %v488_v18 = vsel %vm392_vm2, %v481_v47, %v487_v1 }
 0x810   :  { %v489_v53 = vsel %vm394_vm3, %v482_v0, %v488_v18 }
 0x811   :  { %v490_v3 = vsel %vm396_vm6, %v483_v2, %v489_v53 }
 0x812   :  { %v492_v43 = vsel %vm399_vm7, %v490_v3, 0.0 }
 0x813   :  { %493 = vadd.xlane.f32.xlu1 %v492_v43 }
 0x886   :  { %v494_v44 = vpop.xlane.xlu1 %493 }
 0x887   :  { %1493 = vrcp.f32 %v494_v44 }
 0x88d   :  { %v1494_v26 = vpop.eup %1493 }
 0x88e   :  { %v498_v29 = vperm.slane %v1494_v26, 1  ;;  %v497_v58 = vperm.slane %v1494_v26, 0  ;;  %v500_v14 = vperm.slane %v1494_v26, 3  ;;  %v499_v50 = vperm.slane %v1494_v26, 2 }
 0x88f   :  { %v502_v51 = vperm.slane %v1494_v26, 5  ;;  %v501_v52 = vperm.slane %v1494_v26, 4  ;;  %v504_v0 = vperm.slane %v1494_v26, 7  ;;  %v503_v1 = vperm.slane %v1494_v26, 6 }
 0x890   :  { %v514_v32 = vmul.f32 %v1480_v12, %v498_v29  ;;  %v513_v62 = vmul.f32 %v1482_v56, %v497_v58  ;;  %v516_v19 = vmul.f32 %v1486_v59, %v500_v14  ;;  %v515_v27 = vmul.f32 %v2027_v4, %v499_v50 }
 0x891   :  { %v518_v45 = vmul.f32 %v1492_v48, %v502_v51  ;;  %v517_v47 = vmul.f32 %v1484_v30, %v501_v52  ;;  %v520_v2 = vmul.f32 %v1488_v61, %v504_v0  ;;  %v519_v12 = vmul.f32 %v1490_v13, %v503_v1 }
 0x892   :  { %528 = vperm.xlu0 %1450, %v514_v32   ;;  %523 = vperm.xlu2 %1452, %v513_v62  }
 0x89a   :  { %538 = vperm.xlu0 %1450, %v516_v19   ;;  %533 = vperm.xlu2 %1452, %v515_v27  }
 0x8a2   :  { %548 = vperm.xlu0 %1450, %v518_v45   ;;  %543 = vperm.xlu2 %1452, %v517_v47  }
 0x8aa   :  { %558 = vperm.xlu0 %1450, %v520_v2   ;;  %553 = vperm.xlu2 %1452, %v519_v12  }
 0x8ec   :  { %v524_v56 = vpop.permute.xlu2 %523 }
 0x8ed   :  { %v561_v18 = vmul.f32 %v524_v56, %v1977_v63 }
 0x8ef   :  { %v569_v59 = vsel %vm157_vm4, %v561_v18, 0.0 }
 0x8f0   :  { %v570_v4 = vrot.slane %v569_v59, 4 }
 0x8f2   :  { %v571_v53 = vadd.f32 %v570_v4, %v569_v59 }
 0x8f4   :  { %v572_v3 = vrot.slane %v571_v53, 2  ;;  %v534_v43 = vpop.permute.xlu2 %533 }
 0x8f5   :  { %v563_v48 = vmul.f32 %v534_v43, %v1981_v33 }
 0x8f6   :  { %v573_v30 = vadd.f32 %v572_v3, %v571_v53 }
 0x8f7   :  { %v583_v44 = vsel %vm157_vm4, %v563_v48, 0.0 }
 0x8f8   :  { %v574_v29 = vrot.slane %v573_v30, 1  ;;  %v584_v26 = vrot.slane %v583_v44, 4 }
 0x8fa   :  { %v2051_v61 = vadd.f32 %v574_v29, %v573_v30   ;;  %v585_v13 = vadd.f32 %v584_v26, %v583_v44 }
 0x8fc   :  { %v586_v58 = vrot.slane %v585_v13, 2  ;;  %v544_v32 = vpop.permute.xlu2 %543 }
 0x8fd   :  { %v565_v63 = vmul.f32 %v544_v32, %v1993_v57 }
 0x8fe   :  { %v587_v62 = vadd.f32 %v586_v58, %v585_v13 }
 0x8ff   :  { %v597_v14 = vsel %vm157_vm4, %v565_v63, 0.0 }
 0x900   :  { %v588_v50 = vrot.slane %v587_v62, 1  ;;  %v598_v19 = vrot.slane %v597_v14, 4 }
 0x902   :  { %v589_v27 = vadd.f32 %v588_v50, %v587_v62   ;;  %v599_v51 = vadd.f32 %v598_v19, %v597_v14 }
 0x904   :  { %v600_v33 = vrot.slane %v599_v51, 2  ;;  %v529_v52 = vpop.permute.xlu0 %528  ;;  %v554_v45 = vpop.permute.xlu2 %553 }
 0x905   :  { %v562_v47 = vmul.f32 %v529_v52, %v1983_v41  ;;  %v567_v0 = vmul.f32 %v554_v45, %v1991_v55 }
 0x906   :  { %v601_v1 = vadd.f32 %v600_v33, %v599_v51 }
 0x907   :  { %v576_v2 = vsel %vm157_vm4, %v562_v47, 0.0  ;;  %v611_v12 = vsel %vm157_vm4, %v567_v0, 0.0 }
 0x908   :  { %v602_v57 = vrot.slane %v601_v1, 1  ;;  %v577_v56 = vrot.slane %v576_v2, 4  ;;  %v612_v18 = vrot.slane %v611_v12, 4 }
 0x90a   :  { %v603_v59 = vadd.f32 %v602_v57, %v601_v1   ;;  %v578_v4 = vadd.f32 %v577_v56, %v576_v2  ;;  %v613_v53 = vadd.f32 %v612_v18, %v611_v12 }
 0x90c   :  { %v579_v3 = vrot.slane %v578_v4, 2  ;;  %v614_v43 = vrot.slane %v613_v53, 2  ;;  %v539_v48 = vpop.permute.xlu0 %538 }
 0x90d   :  { %v564_v30 = vmul.f32 %v539_v48, %v1989_v54  ;;  %v2406_v48 = vperm.slane %v1913_v17, 0  }
 0x90e   :  { %v580_v44 = vadd.f32 %v579_v3, %v578_v4  ;;  %v615_v41 = vadd.f32 %v614_v43, %v613_v53 }
 0x90f   :  { %v590_v55 = vsel %vm157_vm4, %v564_v30, 0.0  ;;  %v2407_v30 = vperm.slane %v1871_v31, 0  }
 0x910   :  { %v581_v29 = vrot.slane %v580_v44, 1  ;;  %v616_v26 = vrot.slane %v615_v41, 1  ;;  %v591_v13 = vrot.slane %v590_v55, 4 }
 0x912   :  { %v582_v58 = vadd.f32 %v581_v29, %v580_v44   ;;  %v617_v32 = vadd.f32 %v616_v26, %v615_v41   ;;  %v592_v63 = vadd.f32 %v591_v13, %v590_v55  ;;  %v2408_v44 = vperm.slane %v1939_v28, 0  }
 0x913   :  { %v2409_v41 = vperm.slane %v1897_v42, 0  }
 0x914   :  { %v593_v62 = vrot.slane %v592_v63, 2  ;;  %v549_v14 = vpop.permute.xlu0 %548 }
 0x915   :  { %v566_v50 = vmul.f32 %v549_v14, %v2001_v15 }
 0x916   :  { %v594_v19 = vadd.f32 %v593_v62, %v592_v63 }
 0x917   :  { %v604_v51 = vsel %vm157_vm4, %v566_v50, 0.0 }
 0x918   :  { %v595_v33 = vrot.slane %v594_v19, 1  ;;  %v605_v52 = vrot.slane %v604_v51, 4 }
 0x91a   :  { %v596_v54 = vadd.f32 %v595_v33, %v594_v19   ;;  %v606_v45 = vadd.f32 %v605_v52, %v604_v51 }
 0x91c   :  { %v607_v47 = vrot.slane %v606_v45, 2  ;;  %v559_v0 = vpop.permute.xlu0 %558 }
 0x91d   :  { %v568_v1 = vmul.f32 %v559_v0, %v2003_v49  ;;  %v2405_v49 = vperm.slane %v1954_v16, 0  }
 0x91e   :  { %v608_v2 = vadd.f32 %v607_v47, %v606_v45 }
 0x91f   :  { %v618_v12 = vsel %vm157_vm4, %v568_v1, 0.0 }
 0x920   :  { %v609_v57 = vrot.slane %v608_v2, 1  ;;  %v619_v56 = vrot.slane %v618_v12, 4 }
 0x922   :  { %v610_v18 = vadd.f32 %v609_v57, %v608_v2   ;;  %v620_v4 = vadd.f32 %v619_v56, %v618_v12 }
 0x924   :  { %v621_v53 = vrot.slane %v620_v4, 2 }
 0x926   :  { %v622_v15 = vadd.f32 %v621_v53, %v620_v4 }
 0x928   :  { %v623_v3 = vrot.slane %v622_v15, 1 }
 0x92a   :  { %v624_v43 = vadd.f32 %v623_v3, %v622_v15  }
 0x92b LB: > { %687 = vmatpush.msra.mxu0 %v1863_v11  ;;  %763 = vmatpush.msra.mxu1 %v1876_v34  ;;  %s1799_s12 = smov 64   ;;  %v664_v31 = vsel %vm384_vm14, %v1754_v58, %v1758_v61  ;;  %s1800_s13 = smov 32   ;;  %v2411_v55 = vld [vmem:[#allocation23_spill] sm:$0xff]  ;;  %v2412_v29 = vld [vmem:[#allocation21_spill] sm:$0xff]  ;;  %v2413_v26 = vld [vmem:[#allocation18_spill] sm:$0xff]  ;;  %vm679_vm8 = vcmask 785408   ;;  %s1786_s11 = sphi %s2105_s11, %s637_s11   ;;  %v1782_v41 = vphi %v2409_v41, %v2184_v41   ;;  %v1778_v44 = vphi %v2408_v44, %v2200_v44   ;;  %v1774_v46 = vphi %v1959_v46, %v2433_v46   ;;  %v1770_v30 = vphi %v2407_v30, %v2180_v30   ;;  %v1766_v48 = vphi %v2406_v48, %v2196_v48   ;;  %v1762_v49 = vphi %v2405_v49, %v2210_v49   ;;  %v1758_v61 = vphi %v2051_v61, %v2432_v61   ;;  %v1754_v58 = vphi %v582_v58, %v2431_v58   ;;  %v1750_v27 = vphi %v589_v27, %v2430_v27   ;;  %v1746_v54 = vphi %v596_v54, %v2429_v54   ;;  %v1742_v59 = vphi %v603_v59, %v2428_v59   ;;  %v1738_v18 = vphi %v610_v18, %v2427_v18   ;;  %v1734_v32 = vphi %v617_v32, %v2426_v32   ;;  %v1730_v43 = vphi %v624_v43, %v2425_v43  }
 0x92c   : > { %834 = vmatpush.msra.mxu2 %v1918_v20  ;;  %653 = vrot.lane.b32.xlu0 %v1774_v46, %s1799_s12  ;;  %v665_v42 = vsel %vm386_vm15, %v1750_v27, %v664_v31  ;;  %v2414_v13 = vld [vmem:[#allocation24_spill] sm:$0xff]  ;;  %v2415_v58 = vld [vmem:[#allocation17_spill] sm:$0xff]  ;;  %v2417_v63 = vld [vmem:[#allocation15_spill] sm:$0xff]  ;;  %s1801_s14 = smov 96   ;;  %s637_s11 = sadd.s32 1, %s1786_s11  }
 0x92d   : > { %688 = vmatpush.msra.mxu0 %v1861_v10  ;;  %764 = vmatpush.msra.mxu1 %v1878_v35  ;;  %v666_v17 = vsel %vm388_vm0, %v1746_v54, %v665_v42  ;;  %v2418_v51 = vld [vmem:[#allocation20_spill] sm:$0xff]  ;;  %p2321_p0 = scmp.ge.s32.totalorder %s637_s11, 5  }
 0x92e   : > { %835 = vmatpush.msra.mxu2 %v1920_v21  ;;  %v667_v28 = vsel %vm390_vm1, %v1742_v59, %v666_v17  ;;  %v2410_v59 = vld [vmem:[#allocation19_spill] sm:$0xff]  ;;  %v677_v33 = vperm.slane %v2418_v51, 0  ;;  %s1803_s16 = smov (%p2321_p0), [#allocation10]   ;;  %s1244_s20 = sshll.u32 (%p2321_p0), %s2386_s4, 4  ;;  %s1245_s20 = int_to_ptr.hbm [resolvable:$true] %s1244_s20 }
 0x92f   : > { %689 = vmatpush.msra.mxu0 %v1859_v9  ;;  %765 = vmatpush.msra.mxu1 %v1881_v36  ;;  %v668_v16 = vsel %vm392_vm2, %v1738_v18, %v667_v28  ;;  %s1242_s17 = sshll.u32 (%p2321_p0), %s1803_s16, 4  ;;  %s1243_s17 = int_to_ptr.vmem [resolvable:$true] %s1242_s17 }
 0x930   : > { %836 = vmatpush.msra.mxu2 %v1923_v22  ;;  %v669_v61 = vsel %vm394_vm3, %v1734_v32, %v668_v16  ;;  %v2416_v32 = vld [vmem:[#allocation16_spill] sm:$0xff] }
 0x931   : > { %690 = vmatpush.msra.mxu0 %v1857_v8  ;;  %766 = vmatpush.msra.mxu1 %v1884_v37  ;;  %v670_v27 = vsel %vm396_vm6, %v1730_v43, %v669_v61 }
 0x932   : > { %837 = vmatpush.msra.mxu2 %v1926_v23 }
 0x933   : > { %691 = vmatpush.msra.mxu0 %v1855_v7  ;;  %767 = vmatpush.msra.mxu1 %v1887_v38 }
 0x934   : > { %838 = vmatpush.msra.mxu2 %v1929_v24  ;;  %671 = vrot.lane.b32.xlu0 %v670_v27, %s1800_s13 }
 0x935   : > { %692 = vmatpush.msra.mxu0 %v1853_v6  ;;  %768 = vmatpush.msra.mxu1 %v1890_v39 }
 0x936   : > { %839 = vmatpush.msra.mxu2 %v1932_v25 }
 0x937   : > { %693 = vmatpush.msra.mxu0 %v1851_v5  ;;  %769 = vmatpush.msra.mxu1 %v1893_v40 }
 0x938   : > { %840 = vmatpush.msra.mxu2 %v2411_v55 }
 0x939   : > { %694 = vmatpush.msra.mxu0 %v2410_v59  ;;  %770 = vmatpush.msra.mxu1 %v2412_v29  ;;  %v2419_v59 = vld [vmem:[#allocation22_spill] sm:$0xff] }
 0x93a   : > { %841 = vmatpush.msra.mxu2 %v2414_v13  ;;  %v750_v55 = vperm.slane %v2419_v59, 0 }
 0x93b   : > { %695 = vmatpush.msra.mxu0 %v2413_v26 }
 0x93c   : > { %745 = vrot.lane.b32.xlu0 %v1778_v44, %s1801_s14 }
 0x93d   : > { %696 = vmatpush.msra.mxu0 %v2415_v58 }
 0x93f   : > { %697 = vmatpush.msra.mxu0 %v2416_v32 }
 0x941   : > { %698 = vmatpush.msra.mxu0 %v2417_v63 }
 0x99e   : > { %v654_v62 = vpop.permute.xlu0 %653 }
 0x9a6   : > { %v672_v14 = vpop.permute.xlu0 %671 }
 0x9a7   : > { %v674_v50 = vsel %vm157_vm4, %v654_v62, %v672_v14 }
 0x9a8   : > { %v675_v19 = vsel %vm159_vm5, %v674_v50, %v1782_v41 }
 0x9a9   : > { %1308 = vmatmul.msk.f32.vlgmr.msra.gmra.mxu0 %vm679_vm8, %v675_v19 }
 0x9ae   : > { %v746_v61 = vpop.permute.xlu0 %745 }
 0xa26   : > { %v700_v52 = vpop.f32.mrf.mxu0 }
 0xa27   : > { %v701_v54 = vadd.f32 %v700_v52, %v677_v33 }
 0xa29   : > { %1498 = vtanh.f32 %v701_v54  ;;  %v1309_v47 = vmul.f32 -1.442695, %v701_v54 }
 0xa2b   : > { %1500 = vpow2.f32 %v1309_v47 }
 0xa2f   : > { %v1499_v45 = vpop.eup %1498 }
 0xa30   : > { %725 = vrot.lane.b32.xlu1 %v1499_v45, %s1800_s13 }
 0xa31   : > { %v1501_v0 = vpop.eup %1500 }
 0xa32   : > { %v706_v1 = vadd.f32 1.0, %v1501_v0 }
 0xa34   : > { %1502 = vrcp.f32 %v706_v1  ;;  %v718_v4 = vand.u32 2147483648, %v706_v1  ;;  %vm712_vm10 = vweird.f32 %v706_v1  ;;  %v716_v53 = vand.u32 2147483647, %v706_v1 }
 0xa36   : > { %v719_v3 = vor.u32 1.1754944e-38, %v718_v4  ;;  %vm717_vm12 = vcmp.eq.f32.partialorder %v716_v53, 8.507059e+37  ;;  %v2420_v53 = vld [vmem:[#allocation25_spill] sm:$0xff] }
 0xa3a   : > { %v1503_v2 = vpop.eup %1502 }
 0xa3b   : > { %v708_v12 = vmul.f32 %v1503_v2, %v706_v1  ;;  %vm713_vm9 = vweird.f32 %v1503_v2 }
 0xa3c   : > { %vm714_vm11 = vmor %vm712_vm10, %vm713_vm9 }
 0xa3d   : > { %v709_v57 = vsub.f32 1.0, %v708_v12 }
 0xa3f   : > { %v710_v56 = vmul.f32 %v1503_v2, %v709_v57 }
 0xa41   : > { %v711_v18 = vadd.f32 %v1503_v2, %v710_v56 }
 0xa43   : > { %v715_v15 = vsel %vm714_vm11, %v1503_v2, %v711_v18 }
 0xa44   : > { %v720_v41 = vsel %vm717_vm12, %v719_v3, %v715_v15  ;;  %v821_v15 = vperm.slane %v2420_v53, 0 }
 0xa45   : > { %v723_v42 = vmul.f32 %v1770_v30, %v720_v41 }
 0xaa2   : > { %v726_v43 = vpop.permute.xlu1 %725 }
 0xaa3   : > { %v728_v31 = vmul.f32 %v726_v43, %v720_v41 }
 0xaa5   : > { %730 = vrot.lane.b32.xlu1 %v728_v31, %s1800_s13 }
 0xb17   : > { %v731_v17 = vpop.permute.xlu1 %730 }
 0xb18   : > { %v2180_v30 = vadd.f32 %v731_v17, %v723_v42  }
 0xb1a   : > { %1504 = vtanh.f32 %v2180_v30 }
 0xb20   : > { %v1505_v28 = vpop.eup %1504 }
 0xb21   : > { %736 = vrot.lane.b32.xlu2 %v1505_v28, %s1800_s13 }
 0xb7b   : > { %v737_v16 = vpop.permute.xlu2 %736 }
 0xb7c   : > { %v2184_v41 = vmul.f32 %v737_v16, %v720_v41  }
 0xb7e   : > { %741 = vrot.lane.b32.xlu2 %v2184_v41, %s1799_s12 }
 0xbd8   : > { %v742_v27 = vpop.permute.xlu2 %741 }
 0xbd9   : > { %v748_v44 = vsel %vm157_vm4, %v742_v27, %v746_v61 }
 0xbda   : > { %1310 = vmatmul.msk.f32.vlgmr.msra.gmra.mxu1 %vm159_vm5, %v748_v44 }
 0xc57   : > { %v772_v29 = vpop.f32.mrf.mxu1 }
 0xc58   : > { %v773_v26 = vadd.f32 %v772_v29, %v750_v55 }
 0xc5a   : > { %1506 = vtanh.f32 %v773_v26  ;;  %v1311_v58 = vmul.f32 -1.442695, %v773_v26 }
 0xc5c   : > { %1508 = vpow2.f32 %v1311_v58 }
 0xc60   : > { %v1507_v13 = vpop.eup %1506 }
 0xc61   : > { %797 = vrot.lane.b32.xlu1 %v1507_v13, %s1800_s13 }
 0xc62   : > { %v1509_v32 = vpop.eup %1508 }
 0xc63   : > { %v778_v63 = vadd.f32 1.0, %v1509_v32 }
 0xc65   : > { %1510 = vrcp.f32 %v778_v63  ;;  %v790_v33 = vand.u32 2147483648, %v778_v63  ;;  %vm784_vm8 = vweird.f32 %v778_v63  ;;  %v788_v52 = vand.u32 2147483647, %v778_v63 }
 0xc67   : > { %v791_v45 = vor.u32 1.1754944e-38, %v790_v33  ;;  %vm789_vm10 = vcmp.eq.f32.partialorder %v788_v52, 8.507059e+37 }
 0xc6b   : > { %v1511_v62 = vpop.eup %1510 }
 0xc6c   : > { %v780_v14 = vmul.f32 %v1511_v62, %v778_v63  ;;  %vm785_vm13 = vweird.f32 %v1511_v62 }
 0xc6d   : > { %vm786_vm9 = vmor %vm784_vm8, %vm785_vm13 }
 0xc6e   : > { %v781_v50 = vsub.f32 1.0, %v780_v14 }
 0xc70   : > { %v782_v19 = vmul.f32 %v1511_v62, %v781_v50 }
 0xc72   : > { %v783_v51 = vadd.f32 %v1511_v62, %v782_v19 }
 0xc74   : > { %v787_v54 = vsel %vm786_vm9, %v1511_v62, %v783_v51 }
 0xc75   : > { %v792_v0 = vsel %vm789_vm10, %v791_v45, %v787_v54 }
 0xc76   : > { %v795_v2 = vmul.f32 %v1766_v48, %v792_v0 }
 0xcd3   : > { %v798_v47 = vpop.permute.xlu1 %797 }
 0xcd4   : > { %v800_v1 = vmul.f32 %v798_v47, %v792_v0 }
 0xcd6   : > { %802 = vrot.lane.b32.xlu2 %v800_v1, %s1800_s13 }
 0xcde   : > { %816 = vrot.lane.b32.xlu2 %v1774_v46, %s1801_s14 }
 0xd30   : > { %v803_v12 = vpop.permute.xlu2 %802 }
 0xd31   : > { %v2196_v48 = vadd.f32 %v803_v12, %v795_v2  }
 0xd33   : > { %1512 = vtanh.f32 %v2196_v48 }
 0xd38   : > { %v817_v18 = vpop.permute.xlu2 %816 }
 0xd39   : > { %v1513_v57 = vpop.eup %1512 }
 0xd3a   : > { %808 = vrot.lane.b32.xlu0 %v1513_v57, %s1800_s13 }
 0xdac   : > { %v809_v56 = vpop.permute.xlu0 %808 }
 0xdad   : > { %v2200_v44 = vmul.f32 %v809_v56, %v792_v0  }
 0xdaf   : > { %813 = vrot.lane.b32.xlu1 %v2200_v44, %s1799_s12 }
 0xe21   : > { %v814_v4 = vpop.permute.xlu1 %813 }
 0xe22   : > { %v819_v46 = vsel %vm157_vm4, %v814_v4, %v817_v18 }
 0xe23   : > { %1312 = vmatmul.msk.f32.vlgmr.msra.gmra.mxu2 %vm159_vm5, %v819_v46 }
 0xea6   : > { %v843_v3 = vpop.f32.mrf.mxu2 }
 0xea7   : > { %v844_v43 = vadd.f32 %v843_v3, %v821_v15  ;;  %v2232_v3 = vld [vmem:[#allocation2 + $0x10] sm:$0xff] }
 0xea9   : > { %1514 = vtanh.f32 %v844_v43  ;;  %v1313_v42 = vmul.f32 -1.442695, %v844_v43 }
 0xeab   : > { %1516 = vpow2.f32 %v1313_v42 }
 0xeaf   : > { %v1515_v31 = vpop.eup %1514 }
 0xeb0   : > { %868 = vrot.lane.b32.xlu0 %v1515_v31, %s1800_s13 }
 0xeb1   : > { %v1517_v17 = vpop.eup %1516 }
 0xeb2   : > { %v849_v28 = vadd.f32 1.0, %v1517_v17  ;;  %v2236_v17 = vld [vmem:[#allocation2] sm:$0xff] }
 0xeb4   : > { %1518 = vrcp.f32 %v849_v28  ;;  %v861_v29 = vand.u32 2147483648, %v849_v28  ;;  %vm855_vm12 = vweird.f32 %v849_v28  ;;  %v859_v26 = vand.u32 2147483647, %v849_v28 }
 0xeb6   : > { %v862_v58 = vor.u32 1.1754944e-38, %v861_v29  ;;  %vm860_vm8 = vcmp.eq.f32.partialorder %v859_v26, 8.507059e+37  ;;  %v2244_v26 = vld [vmem:[#allocation2 + $0x28] sm:$0xff] }
 0xeba   : > { %v1519_v16 = vpop.eup %1518 }
 0xebb   : > { %v851_v61 = vmul.f32 %v1519_v16, %v849_v28  ;;  %vm856_vm11 = vweird.f32 %v1519_v16 }
 0xebc   : > { %vm857_vm13 = vmor %vm855_vm12, %vm856_vm11 }
 0xebd   : > { %v852_v27 = vsub.f32 1.0, %v851_v61 }
 0xebf   : > { %v853_v59 = vmul.f32 %v1519_v16, %v852_v27 }
 0xec1   : > { %v854_v55 = vadd.f32 %v1519_v16, %v853_v59 }
 0xec3   : > { %v858_v13 = vsel %vm857_vm13, %v1519_v16, %v854_v55  ;;  %v2238_v16 = vld [vmem:[#allocation2 + $0x8] sm:$0xff] }
 0xec4   : > { %v863_v63 = vsel %vm860_vm8, %v862_v58, %v858_v13  ;;  %v2246_v58 = vld [vmem:[#allocation2 + $0x18] sm:$0xff] }
 0xec5   : > { %v866_v14 = vmul.f32 %v1762_v49, %v863_v63 }
 0xf22   : > { %v869_v32 = vpop.permute.xlu0 %868 }
 0xf23   : > { %v871_v62 = vmul.f32 %v869_v32, %v863_v63 }
 0xf25   : > { %873 = vrot.lane.b32.xlu1 %v871_v62, %s1800_s13 }
 0xf97   : > { %v874_v50 = vpop.permute.xlu1 %873 }
 0xf98   : > { %v2210_v49 = vadd.f32 %v874_v50, %v866_v14  }
 0xf9a   : > { %1520 = vtanh.f32 %v2210_v49 }
 0xfa0   : > { %v1521_v19 = vpop.eup %1520 }
 0xfa1   : > { %879 = vrot.lane.b32.xlu2 %v1521_v19, %s1800_s13  ;;  %v2251_v19 = vld [vmem:[#allocation2 + $0x20] sm:$0xff] }
 0xffb   : > { %v880_v51 = vpop.permute.xlu2 %879 }
 0xffc   : > { %v2214_v46 = vmul.f32 %v880_v51, %v863_v63  }
 0xffe   : > { %v2421_v33 = vmov %v2214_v46 }
 0xfff   : > { %v899_v52 = vperm.slane %v2421_v33, 0  ;;  %v893_v54 = vrot.slane %v2421_v33, 2  ;;  %v892_v45 = vrot.slane %v2421_v33, 1  ;;  %v894_v1 = vrot.slane %v2421_v33, 3 }
0x1000   : > { %v896_v2 = vrot.slane %v2421_v33, 5  ;;  %v895_v12 = vrot.slane %v2421_v33, 4  ;;  %v897_v4 = vrot.slane %v2421_v33, 6  ;;  %v898_v46 = vrot.slane %v2421_v33, 7 }
0x1001   : > { %907 = vrot.lane.b32.xlu0 %v899_v52, %s1799_s12  ;;  %v901_v47 = vperm.slane %v893_v54, 0  ;;  %v900_v0 = vperm.slane %v892_v45, 0  ;;  %v902_v57 = vperm.slane %v894_v1, 0  ;;  %v2254_v52 = vld [vmem:[#allocation2 + $0x30] sm:$0xff] }
0x1002   : > { %v904_v56 = vperm.slane %v896_v2, 0  ;;  %v903_v18 = vperm.slane %v895_v12, 0  ;;  %v905_v53 = vperm.slane %v897_v4, 0  ;;  %v906_v15 = vperm.slane %v898_v46, 0  ;;  %v2260_v2 = vld [vmem:[#allocation2 + $0x38] sm:$0xff] }
0x1003   : > { %911 = vrot.lane.b32.xlu2 %v901_v47, %s1799_s12  ;;  %909 = vrot.lane.b32.xlu1 %v900_v0, %s1799_s12 }
0x1009   : > { %913 = vrot.lane.b32.xlu0 %v902_v57, %s1799_s12 }
0x100b   : > { %917 = vrot.lane.b32.xlu2 %v904_v56, %s1799_s12  ;;  %915 = vrot.lane.b32.xlu1 %v903_v18, %s1799_s12 }
0x1011   : > { %919 = vrot.lane.b32.xlu0 %v905_v53, %s1799_s12 }
0x1013   : > { %921 = vrot.lane.b32.xlu1 %v906_v15, %s1799_s12 }
0x105d   : > { %v912_v43 = vpop.permute.xlu2 %911 }
0x105e   : > { %v933_v31 = vmul.f32 %v912_v43, %v2232_v3 }
0x1060   : > { %v945_v42 = vsel %vm157_vm4, %v933_v31, 0.0 }
0x1061   : > { %946 = vadd.xlane.f32.xlu1 %v945_v42 }
0x1065   : > { %v918_v13 = vpop.permute.xlu2 %917 }
0x1066   : > { %v936_v63 = vmul.f32 %v918_v13, %v2244_v26 }
0x1068   : > { %v954_v51 = vsel %vm157_vm4, %v936_v63, 0.0 }
0x1073   : > { %v908_v28 = vpop.permute.xlu0 %907 }
0x1074   : > { %v931_v61 = vmul.f32 %v908_v28, %v2236_v17 }
0x1075   : > { %v910_v27 = vpop.permute.xlu1 %909 }
0x1076   : > { %v932_v59 = vmul.f32 %v910_v27, %v2238_v16  ;;  %v939_v55 = vsel %vm157_vm4, %v931_v61, 0.0 }
0x1077   : > { %940 = vadd.xlane.f32.xlu2 %v939_v55 }
0x1078   : > { %v942_v29 = vsel %vm157_vm4, %v932_v59, 0.0 }
0x1079   : > { %943 = vadd.xlane.f32.xlu0 %v942_v29 }
0x107b   : > { %v914_v32 = vpop.permute.xlu0 %913 }
0x107c   : > { %v934_v62 = vmul.f32 %v914_v32, %v2246_v58 }
0x107d   : > { %v916_v14 = vpop.permute.xlu1 %915 }
0x107e   : > { %v948_v50 = vsel %vm157_vm4, %v934_v62, 0.0  ;;  %v935_v54 = vmul.f32 %v916_v14, %v2251_v19 }
0x107f   : > { %949 = vadd.xlane.f32.xlu2 %v948_v50 }
0x1080   : > { %v951_v1 = vsel %vm157_vm4, %v935_v54, 0.0 }
0x1081   : > { %955 = vadd.xlane.f32.xlu0 %v954_v51 }
0x1083   : > { %v920_v45 = vpop.permute.xlu0 %919 }
0x1084   : > { %v937_v47 = vmul.f32 %v920_v45, %v2254_v52 }
0x1085   : > { %v922_v12 = vpop.permute.xlu1 %921 }
0x1086   : > { %v957_v0 = vsel %vm157_vm4, %v937_v47, 0.0  ;;  %v938_v57 = vmul.f32 %v922_v12, %v2260_v2 }
0x1087   : > { %958 = vadd.xlane.f32.xlu1 %v957_v0  ;;  %952 = vadd.xlane.f32.xlu2 %v951_v1  ;;  %v1802_v0 = vmov 0  }
0x1088   : > { %v960_v56 = vsel %vm157_vm4, %v938_v57, 0.0  ;;  %1497 = vset.pattern.permute.xlu0 %v1802_v0  ;;  %1496 = vset.pattern.permute.xlu2 %v1802_v0 }
0x1089   : > { %1495 = vset.pattern.permute.xlu1 %v1802_v0 }
0x108f   : > { %961 = vadd.xlane.f32.xlu2 %v960_v56 }
0x10d4   : > { %v947_v15 = vpop.xlane.xlu1 %946 }
0x10d5   : > { %v973_v28 = vperm.slane %v947_v15, %v2009_v60 }
0x10ea   : > { %v941_v18 = vpop.xlane.xlu2 %940 }
0x10eb   : > { %v971_v43 = vperm.slane %v941_v18, %v2009_v60 }
0x10ec   : > { %v944_v4 = vpop.xlane.xlu0 %943 }
0x10ed   : > { %v972_v53 = vperm.slane %v944_v4, %v2009_v60 }
0x10ef   : > { %v979_v31 = vsel %vm384_vm14, %v972_v53, %v971_v43 }
0x10f0   : > { %v980_v59 = vsel %vm386_vm15, %v973_v28, %v979_v31 }
0x10f2   : > { %v950_v46 = vpop.xlane.xlu2 %949 }
0x10f3   : > { %v974_v42 = vperm.slane %v950_v46, %v2009_v60 }
0x10f4   : > { %v956_v55 = vpop.xlane.xlu0 %955 }
0x10f5   : > { %v981_v29 = vsel %vm388_vm0, %v974_v42, %v980_v59  ;;  %v976_v32 = vperm.slane %v956_v55, %v2009_v60 }
0x10fa   : > { %v953_v61 = vpop.xlane.xlu2 %952  ;;  %v959_v63 = vpop.xlane.xlu1 %958 }
0x10fb   : > { %v975_v27 = vperm.slane %v953_v61, %v2009_v60  ;;  %v977_v14 = vperm.slane %v959_v63, %v2009_v60 }
0x10fd   : > { %v982_v13 = vsel %vm390_vm1, %v975_v27, %v981_v29 }
0x10fe   : > { %v983_v62 = vsel %vm392_vm2, %v976_v32, %v982_v13 }
0x10ff   : > { %v984_v54 = vsel %vm394_vm3, %v977_v14, %v983_v62 }
0x1102   : > { %v962_v50 = vpop.xlane.xlu2 %961 }
0x1103   : > { %v978_v51 = vperm.slane %v962_v50, %v2009_v60 }
0x1105   : > { %v985_v45 = vsel %vm396_vm6, %v978_v51, %v984_v54 }
0x1106   : > { %v987_v47 = vsel %vm399_vm7, %v985_v45, -inf }
0x1107   : > { %988 = vmax.xlane.f32.xlu0 %v987_v47 }
0x117a   : > { %v989_v1 = vpop.xlane.xlu0 %988 }
0x117b   : > { %v993_v12 = vperm.slane %v989_v1, 2  ;;  %v992_v57 = vperm.slane %v989_v1, 1  ;;  %v991_v56 = vperm.slane %v989_v1, 0  ;;  %v995_v42 = vperm.slane %v989_v1, 4 }
0x117c   : > { %v994_v28 = vperm.slane %v989_v1, 3  ;;  %v997_v14 = vperm.slane %v989_v1, 6  ;;  %v996_v45 = vperm.slane %v989_v1, 5 }
0x117d   : > { %v1009_v53 = vsub.f32 %v947_v15, %v993_v12  ;;  %v1008_v43 = vsub.f32 %v944_v4, %v992_v57  ;;  %v1007_v31 = vsub.f32 %v941_v18, %v991_v56  ;;  %v1011_v13 = vsub.f32 %v953_v61, %v995_v42 }
0x117e   : > { %v1010_v32 = vsub.f32 %v950_v46, %v994_v28  ;;  %v1013_v4 = vsub.f32 %v959_v63, %v997_v14  ;;  %v1012_v15 = vsub.f32 %v956_v55, %v996_v45  ;;  %v998_v12 = vperm.slane %v989_v1, 7 }
0x117f   : > { %v1019_v27 = vmul.f32 1.442695, %v1009_v53  ;;  %v1017_v59 = vmul.f32 1.442695, %v1008_v43  ;;  %v1015_v29 = vmul.f32 1.442695, %v1007_v31 }
0x1180   : > { %v1023_v62 = vmul.f32 1.442695, %v1011_v13  ;;  %v1021_v54 = vmul.f32 1.442695, %v1010_v32  ;;  %v1027_v0 = vmul.f32 1.442695, %v1013_v4  ;;  %v1014_v56 = vsub.f32 %v962_v50, %v998_v12 }
0x1181   : > { %1522 = vpow2.f32 %v1019_v27  ;;  %v1025_v61 = vmul.f32 1.442695, %v1012_v15 }
0x1182   : > { %1524 = vpow2.f32 %v1017_v59  ;;  %v1029_v53 = vmul.f32 1.442695, %v1014_v56 }
0x1183   : > { %1526 = vpow2.f32 %v1015_v29 }
0x1184   : > { %1528 = vpow2.f32 %v1023_v62 }
0x1185   : > { %1530 = vpow2.f32 %v1021_v54 }
0x1186   : > { %1532 = vpow2.f32 %v1027_v0 }
0x1187   : > { %v2280_v51 = vpop.eup %1522  ;;  %1534 = vpow2.f32 %v1025_v61 }
0x1188   : > { %v1525_v47 = vpop.eup %1524  ;;  %1046 = vperm.xlu0 %1497, %v2280_v51   ;;  %1536 = vpow2.f32 %v1029_v53 }
0x1189   : > { %v1527_v18 = vpop.eup %1526  ;;  %1043 = vperm.xlu2 %1496, %v1525_v47  }
0x118a   : > { %1040 = vperm.xlu1 %1495, %v1527_v18   ;;  %v1529_v46 = vpop.eup %1528 }
0x118b   : > { %v1531_v57 = vpop.eup %1530 }
0x118c   : > { %v1533_v43 = vpop.eup %1532 }
0x118d   : > { %v1535_v31 = vpop.eup %1534 }
0x118e   : > { %v1537_v42 = vpop.eup %1536 }
0x1191   : > { %1052 = vperm.xlu2 %1496, %v1529_v46  }
0x1192   : > { %1049 = vperm.xlu1 %1495, %v1531_v57  }
0x1199   : > { %1058 = vperm.xlu2 %1496, %v1533_v43  }
0x119a   : > { %1055 = vperm.xlu1 %1495, %v1535_v31  }
0x11a2   : > { %1061 = vperm.xlu1 %1495, %v1537_v42  }
0x11e3   : > { %v1044_v55 = vpop.permute.xlu2 %1043 }
0x11e4   : > { %v1064_v29 = vperm.slane %v1044_v55, %v2009_v60 }
0x11eb   : > { %v1053_v27 = vpop.permute.xlu2 %1052 }
0x11ec   : > { %v1067_v4 = vperm.slane %v1053_v27, %v2009_v60 }
0x11f3   : > { %v1059_v15 = vpop.permute.xlu2 %1058 }
0x11f4   : > { %v1069_v12 = vperm.slane %v1059_v15, %v2009_v60 }
0x11fa   : > { %v1047_v1 = vpop.permute.xlu0 %1046 }
0x11fb   : > { %v1065_v13 = vperm.slane %v1047_v1, %v2009_v60 }
0x11fc   : > { %v1041_v63 = vpop.permute.xlu1 %1040 }
0x11fd   : > { %v1063_v59 = vperm.slane %v1041_v63, %v2009_v60 }
0x11ff   : > { %v1071_v50 = vsel %vm384_vm14, %v1064_v29, %v1063_v59 }
0x1200   : > { %v1072_v14 = vsel %vm386_vm15, %v1065_v13, %v1071_v50 }
0x1204   : > { %v1050_v28 = vpop.permute.xlu1 %1049 }
0x1205   : > { %v1066_v32 = vperm.slane %v1050_v28, %v2009_v60 }
0x1207   : > { %v1073_v54 = vsel %vm388_vm0, %v1066_v32, %v1072_v14 }
0x1208   : > { %v1074_v0 = vsel %vm390_vm1, %v1067_v4, %v1073_v54 }
0x120c   : > { %v1056_v62 = vpop.permute.xlu1 %1055 }
0x120d   : > { %v1068_v45 = vperm.slane %v1056_v62, %v2009_v60 }
0x120f   : > { %v1075_v61 = vsel %vm392_vm2, %v1068_v45, %v1074_v0 }
0x1210   : > { %v1076_v63 = vsel %vm394_vm3, %v1069_v12, %v1075_v61 }
0x1214   : > { %v1062_v56 = vpop.permute.xlu1 %1061 }
0x1215   : > { %v1070_v53 = vperm.slane %v1062_v56, %v2009_v60 }
0x1217   : > { %v1077_v55 = vsel %vm396_vm6, %v1070_v53, %v1076_v63 }
0x1218   : > { %v1079_v28 = vsel %vm399_vm7, %v1077_v55, 0.0 }
0x1219   : > { %1080 = vadd.xlane.f32.xlu2 %v1079_v28 }
0x128c   : > { %v1081_v1 = vpop.xlane.xlu2 %1080 }
0x128d   : > { %1538 = vrcp.f32 %v1081_v1 }
0x1293   : > { %v1539_v27 = vpop.eup %1538 }
0x1294   : > { %v1085_v59 = vperm.slane %v1539_v27, 1  ;;  %v1084_v29 = vperm.slane %v1539_v27, 0  ;;  %v1087_v32 = vperm.slane %v1539_v27, 3  ;;  %v1086_v62 = vperm.slane %v1539_v27, 2 }
0x1295   : > { %v1089_v45 = vperm.slane %v1539_v27, 5  ;;  %v1088_v4 = vperm.slane %v1539_v27, 4  ;;  %v1091_v61 = vperm.slane %v1539_v27, 7  ;;  %v1090_v12 = vperm.slane %v1539_v27, 6 }
0x1296   : > { %v1101_v13 = vmul.f32 %v1525_v47, %v1085_v59  ;;  %v1100_v50 = vmul.f32 %v1527_v18, %v1084_v29  ;;  %v1103_v14 = vmul.f32 %v1531_v57, %v1087_v32  ;;  %v1102_v54 = vmul.f32 %v2280_v51, %v1086_v62 }
0x1297   : > { %v1105_v15 = vmul.f32 %v1535_v31, %v1089_v45  ;;  %v1104_v0 = vmul.f32 %v1529_v46, %v1088_v4  ;;  %v1107_v56 = vmul.f32 %v1537_v42, %v1091_v61  ;;  %v1106_v47 = vmul.f32 %v1533_v43, %v1090_v12 }
0x1298   : > { %1115 = vperm.xlu1 %1495, %v1101_v13   ;;  %1110 = vperm.xlu0 %1497, %v1100_v50  }
0x12a0   : > { %1125 = vperm.xlu1 %1495, %v1103_v14   ;;  %1120 = vperm.xlu0 %1497, %v1102_v54  }
0x12a8   : > { %1135 = vperm.xlu1 %1495, %v1105_v15   ;;  %1130 = vperm.xlu0 %1497, %v1104_v0  }
0x12b0   : > { %1145 = vperm.xlu1 %1495, %v1107_v56   ;;  %1140 = vperm.xlu0 %1497, %v1106_v47  }
0x12b8   :  { %1213 = vrot.lane.b32.xlu0 (%p2321_p0), %v2421_v33, %s1797_s3 }
0x130a   : > { %v1116_v18 = vpop.permute.xlu1 %1115  ;;  %v1111_v53 = vpop.permute.xlu0 %1110 }
0x130b   : > { %v1149_v57 = vmul.f32 %v1116_v18, %v2238_v16  ;;  %v1148_v51 = vmul.f32 %v1111_v53, %v2236_v17 }
0x130d   : > { %v1163_v63 = vsel %vm157_vm4, %v1149_v57, 0.0  ;;  %v1156_v55 = vsel %vm157_vm4, %v1148_v51, 0.0 }
0x130e   : > { %v1164_v31 = vrot.slane %v1163_v63, 4  ;;  %v1157_v46 = vrot.slane %v1156_v55, 4 }
0x1310   : > { %v1165_v28 = vadd.f32 %v1164_v31, %v1163_v63  ;;  %v1158_v1 = vadd.f32 %v1157_v46, %v1156_v55 }
0x1312   : > { %v1166_v59 = vrot.slane %v1165_v28, 2  ;;  %v1159_v27 = vrot.slane %v1158_v1, 2  ;;  %v1126_v42 = vpop.permute.xlu1 %1125  ;;  %v1121_v43 = vpop.permute.xlu0 %1120 }
0x1313   : > { %v1151_v29 = vmul.f32 %v1126_v42, %v2246_v58  ;;  %v1150_v13 = vmul.f32 %v1121_v43, %v2232_v3 }
0x1314   : > { %v1167_v50 = vadd.f32 %v1166_v59, %v1165_v28  ;;  %v1160_v16 = vadd.f32 %v1159_v27, %v1158_v1 }
0x1315   : > { %v1177_v17 = vsel %vm157_vm4, %v1151_v29, 0.0  ;;  %v1170_v32 = vsel %vm157_vm4, %v1150_v13, 0.0 }
0x1316   : > { %v1168_v62 = vrot.slane %v1167_v50, 1  ;;  %v1161_v14 = vrot.slane %v1160_v16, 1  ;;  %v1178_v54 = vrot.slane %v1177_v17, 4  ;;  %v1171_v45 = vrot.slane %v1170_v32, 4 }
0x1318   : > { %v2308_v58 = vadd.f32 %v1168_v62, %v1167_v50   ;;  %v2310_v61 = vadd.f32 %v1161_v14, %v1160_v16   ;;  %v1179_v0 = vadd.f32 %v1178_v54, %v1177_v17  ;;  %v1172_v12 = vadd.f32 %v1171_v45, %v1170_v32 }
0x131a   : > { %v2422_v4 = vmov %v2308_v58  ;;  %v2423_v15 = vmov %v2310_v61  ;;  %v1180_v56 = vrot.slane %v1179_v0, 2  ;;  %v1173_v47 = vrot.slane %v1172_v12, 2  ;;  %v1136_v18 = vpop.permute.xlu1 %1135  ;;  %v1131_v3 = vpop.permute.xlu0 %1130 }
0x131b   : > { %v1153_v53 = vmul.f32 %v1136_v18, %v2244_v26  ;;  %v1152_v57 = vmul.f32 %v1131_v3, %v2251_v19 }
0x131c   : > { %v1181_v51 = vadd.f32 %v1180_v56, %v1179_v0  ;;  %v1174_v63 = vadd.f32 %v1173_v47, %v1172_v12 }
0x131d   : > { %v1191_v55 = vsel %vm157_vm4, %v1153_v53, 0.0  ;;  %v1184_v31 = vsel %vm157_vm4, %v1152_v57, 0.0 }
0x131e   : > { %v1182_v46 = vrot.slane %v1181_v51, 1  ;;  %v1175_v58 = vrot.slane %v1174_v63, 1  ;;  %v1192_v28 = vrot.slane %v1191_v55, 4  ;;  %v1185_v61 = vrot.slane %v1184_v31, 4 }
0x1320   : > { %v1183_v1 = vadd.f32 %v1182_v46, %v1181_v51   ;;  %v1176_v42 = vadd.f32 %v1175_v58, %v1174_v63   ;;  %v1193_v59 = vadd.f32 %v1192_v28, %v1191_v55  ;;  %v1186_v27 = vadd.f32 %v1185_v61, %v1184_v31 }
0x1321   : > { %v2431_v58 = vmov %v2422_v4  ;;  %v2432_v61 = vmov %v2423_v15  ;;  %v2433_v46 = vmov %v2421_v33  ;;  %v1224_v31 = vsel (%p2321_p0), %vm384_vm14, %v2422_v4, %v2423_v15 }
0x1322   : > { %v1194_v43 = vrot.slane %v1193_v59, 2  ;;  %v1187_v29 = vrot.slane %v1186_v27, 2  ;;  %v1146_v13 = vpop.permute.xlu1 %1145  ;;  %v1141_v26 = vpop.permute.xlu0 %1140  ;;  %v1225_v28 = vsel (%p2321_p0), %vm386_vm15, %v1176_v42, %v1224_v31 }
0x1323   : > { %v1155_v19 = vmul.f32 %v1146_v13, %v2260_v2  ;;  %v1154_v50 = vmul.f32 %v1141_v26, %v2254_v52 }
0x1324   : > { %v1195_v16 = vadd.f32 %v1194_v43, %v1193_v59  ;;  %v1188_v17 = vadd.f32 %v1187_v29, %v1186_v27  ;;  %v2430_v27 = vmov %v1176_v42  ;;  %v1226_v29 = vsel (%p2321_p0), %vm388_vm0, %v1183_v1, %v1225_v28 }
0x1325   : > { %v1205_v32 = vsel %vm157_vm4, %v1155_v19, 0.0  ;;  %v1198_v62 = vsel %vm157_vm4, %v1154_v50, 0.0 }
0x1326   : > { %v1196_v14 = vrot.slane %v1195_v16, 1  ;;  %v1189_v54 = vrot.slane %v1188_v17, 1  ;;  %v1206_v45 = vrot.slane %v1205_v32, 4  ;;  %v1199_v0 = vrot.slane %v1198_v62, 4 }
0x1328   : > { %v1197_v12 = vadd.f32 %v1196_v14, %v1195_v16   ;;  %v1190_v56 = vadd.f32 %v1189_v54, %v1188_v17   ;;  %v1207_v47 = vadd.f32 %v1206_v45, %v1205_v32  ;;  %v1200_v18 = vadd.f32 %v1199_v0, %v1198_v62 }
0x1329   : > { %v2429_v54 = vmov %v1183_v1 }
0x132a   : > { %v1208_v3 = vrot.slane %v1207_v47, 2  ;;  %v1201_v53 = vrot.slane %v1200_v18, 2  ;;  %v2428_v59 = vmov %v1190_v56  ;;  %v1227_v13 = vsel (%p2321_p0), %vm390_vm1, %v1190_v56, %v1226_v29  ;;  %v1214_v5 = vpop.permute.xlu0 (%p2321_p0), %1213 }
0x132b   :  { %v1228_v26 = vsel (%p2321_p0), %vm392_vm2, %v1197_v12, %v1227_v13 }
0x132c   : > { %v1209_v57 = vadd.f32 %v1208_v3, %v1207_v47  ;;  %v1202_v2 = vadd.f32 %v1201_v53, %v1200_v18  ;;  %v2427_v18 = vmov %v1197_v12 }
0x132e   : > { %v1210_v51 = vrot.slane %v1209_v57, 1  ;;  %v1203_v52 = vrot.slane %v1202_v2, 1  ;;  %636 = sbr.rel (!%p2321_p0) target bundleno = 2347 (0x92b), region = 62 }
0x1330   : > { %v1211_v63 = vadd.f32 %v1210_v51, %v1209_v57   ;;  %v1204_v55 = vadd.f32 %v1203_v52, %v1202_v2  }
0x1332   : > { %v2425_v43 = vmov %v1211_v63  ;;  %v2426_v32 = vmov %v1204_v55  ;;  %v1229_v41 = vsel (%p2321_p0), %vm394_vm3, %v1204_v55, %v1228_v26 }
0x1333   :  { %v1230_v19 = vsel %vm396_vm6, %v1211_v63, %v1229_v41 }
0x1334   :  { %1231 = vrot.lane.b32.xlu0 %v1230_v19, %s1796_s2 }
0x13a6   :  { %v1232_v6 = vpop.permute.xlu0 %1231 }
0x13a7   :  { %v1234_v7 = vsel %vm157_vm4, %v1214_v5, %v1232_v6 }
0x13a8   :  { %v1235_v8 = vsel %vm159_vm5, %v1234_v7, 0.0 }
0x13a9   :  { %1236 = vst [vmem:[#allocation10] sm:$0xff] %v1235_v8 }
0x13aa   :  { %1247 = dma.vmem_to_hbm [thread:$0]  %s1243_s17, 128, %s1245_s20, [#allocation4]  }
0x13ab   :  { %1726 = dma.done.wait [#allocation4], 128  }
0x13ac   :  { %1727 = vsyncadd [#allocation4], 4294967168 }
0x13ad   :  { %1252 = vsyncpa [#allocation3], 1 }
0x13ae   :  { %1253 = vsyncpa [#allocation6], 1 }
0x13af   :  { %1254 = vsyncpa [#allocation9], 1 }
0x13b0   :  { %1255 = vsyncpa [#allocation4], 1 }

</bundles_post_ra>
